<compile_context>
chip_gen: v6e
topology: v6e:2x2x1
jax: 0.10.0
libtpu: 0.0.40
codegen_flags: <defaults>
</compile_context>

<pallas_src>
import functools

import jax
import jax.numpy as jnp
from jax import lax
from jax.experimental import pallas as pl
from jax.experimental.pallas import tpu as pltpu


# ----------------------------- Pallas kernel ------------------------------- #

def _make_fused_lstm_kernel(T, BP, H, num_layers):
    """Fused kernel: all LSTM layers + final FC in one pallas_call.

    Positional refs:
      x_ref                      : (T*BP, D_in)  time-major, batch padded to BP
      (wih_l, whh_l, b_l) * L    : (D_l, 4H), (H, 4H), (1, 4H)
                                   (i/f/o gate columns pre-scaled by 0.5)
      wfc_ref, bfc_ref           : (H, C), (1, C)
      out_ref                    : (L*BP, C)
      seq_ref   [scratch]        : (T*BP, H)   inter-layer hidden sequence
      gx_ref    [scratch]        : (T*BP, 4H)  hoisted input projection (+bias)
      hout_ref  [scratch]        : (L*BP, H)   stacked final hidden states
    """

    def kernel(*refs):
        x_ref = refs[0]
        layer_refs = [(refs[1 + 3 * l], refs[2 + 3 * l], refs[3 + 3 * l])
                      for l in range(num_layers)]
        wfc_ref = refs[1 + 3 * num_layers]
        bfc_ref = refs[2 + 3 * num_layers]
        out_ref = refs[3 + 3 * num_layers]
        seq_ref, gx_ref, hout_ref = refs[4 + 3 * num_layers:]

        for l, (wih_ref, whh_ref, b_ref) in enumerate(layer_refs):
            # ---- Hoisted input projection: one big MXU matmul, bias folded.
            inp = x_ref[...] if l == 0 else seq_ref[...]
            gx_ref[...] = (jnp.dot(inp, wih_ref[...],
                                   preferred_element_type=jnp.float32)
                           + b_ref[...])

            whh = whh_ref[...]                 # resident across the time loop
            last_layer = (l == num_layers - 1)

            def step(t, carry, *, whh=whh, last_layer=last_layer):
                h, c = carry
                # Sublane-tile-aligned per-step slab (BP = 8 rows).
                row = pl.multiple_of(t * BP, BP)
                # Only the recurrent matmul is left on the serial path.
                gates = (jnp.dot(h, whh, preferred_element_type=jnp.float32)
                         + gx_ref[pl.ds(row, BP), :])
                # Single full-vreg tanh over all four gate blocks.
                # i/f/o columns were pre-scaled by 0.5 host-side, so
                # sigmoid(z) == 0.5 + 0.5 * t_all for those blocks (exact).
                t_all = jnp.tanh(gates)
                # Post-tanh gate extraction: lane-offset slices of one vreg,
                # lowered to single XLU lane-rotates (idle slot).
                i = 0.5 + 0.5 * t_all[:, 0 * H:1 * H]
                f = 0.5 + 0.5 * t_all[:, 1 * H:2 * H]
                g = t_all[:, 2 * H:3 * H]
                o = 0.5 + 0.5 * t_all[:, 3 * H:4 * H]
                c_new = f * c + i * g
                h_new = o * jnp.tanh(c_new)
                if not last_layer:
                    # Next layer's input sequence; full aligned slab store.
                    seq_ref[pl.ds(row, BP), :] = h_new
                return h_new, c_new

            h0 = jnp.zeros((BP, H), jnp.float32)
            c0 = jnp.zeros((BP, H), jnp.float32)
            # Fully unrolled serial recurrence (T is small & static).
            h_fin, _ = lax.fori_loop(0, T, step, (h0, c0), unroll=True)
            hout_ref[pl.ds(l * BP, BP), :] = h_fin      # l is a Python int

        # ---- Final FC on the stacked final hidden states: one dense matmul,
        #      one dense output store (once per call — lane-sparsity of C=3 is
        #      negligible at this size).
        out_ref[...] = (jnp.dot(hout_ref[...], wfc_ref[...],
                                preferred_element_type=jnp.float32)
                        + bfc_ref[...])

    return kernel


# ------------------------------ Wrapper ------------------------------------ #

def lstm_forward(x, params):
    """x: (B, T, input_dim), batch_first — same as the PyTorch module."""
    B, T, Din = x.shape
    layers = params["layers"]
    num_layers = len(layers)
    H = layers[0][1].shape[0]
    w_fc_t, b_fc = params["fc"]
    C = w_fc_t.shape[1]

    # Pad batch to a full sublane tile so every per-step VMEM access inside the
    # kernel is 8-row aligned and unmasked.  Padded rows are discarded below.
    BP = 8 * ((B + 7) // 8)

    # Fold the exact 0.5 of sigmoid(z) = 0.5 + 0.5*tanh(0.5*z) into the i/f/o
    # gate columns (gate order i, f, g, o).  *0.5 is exponent-only => exact.
    scale = jnp.concatenate([
        jnp.full((H,), 0.5, jnp.float32),   # i
        jnp.full((H,), 0.5, jnp.float32),   # f
        jnp.ones((H,), jnp.float32),        # g (stays a plain tanh gate)
        jnp.full((H,), 0.5, jnp.float32),   # o
    ])

    # time-major, batch padded: row t*BP + b of x2d is x[b, t, :] for b < B.
    xt = jnp.transpose(x, (1, 0, 2)).astype(jnp.float32)        # (T, B, Din)
    xp = jnp.pad(xt, ((0, 0), (0, BP - B), (0, 0)))             # (T, BP, Din)
    x2d = xp.reshape(T * BP, Din)

    flat_inputs = [x2d]
    for (w_ih_t, w_hh_t, b) in layers:
        flat_inputs += [w_ih_t * scale, w_hh_t * scale, b * scale]
    flat_inputs += [w_fc_t, b_fc]

    kernel = _make_fused_lstm_kernel(T, BP, H, num_layers)
    out_padded = pl.pallas_call(
        kernel,
        out_shape=jax.ShapeDtypeStruct((num_layers * BP, C), jnp.float32),
        in_specs=[pl.BlockSpec(memory_space=pltpu.MemorySpace.VMEM)
                  for _ in flat_inputs],
        out_specs=pl.BlockSpec(memory_space=pltpu.MemorySpace.VMEM),
        scratch_shapes=[pltpu.VMEM((T * BP, H), jnp.float32),        # seq
                        pltpu.VMEM((T * BP, 4 * H), jnp.float32),    # gates_x
                        pltpu.VMEM((num_layers * BP, H), jnp.float32)],  # h_out
    )(*flat_inputs)

    # Drop the padded batch rows: kernel row l*BP + b  ->  output row l*B + b.
    out = out_padded.reshape(num_layers, BP, C)[:, :B, :].reshape(
        num_layers * B, C)
    return out


# ------------------------- Parameter construction -------------------------- #

def init_params(key, input_dim, hidden, num_layers, num_classes):
    k = 1.0 / jnp.sqrt(hidden)
    params = {"layers": [], "fc": None}
    for layer in range(num_layers):
        d_in = input_dim if layer == 0 else hidden
        key, k1, k2, k3, k4 = jax.random.split(key, 5)
        w_ih = jax.random.uniform(k1, (4 * hidden, d_in), jnp.float32, -k, k)
        w_hh = jax.random.uniform(k2, (4 * hidden, hidden), jnp.float32, -k, k)
        b_ih = jax.random.uniform(k3, (4 * hidden,), jnp.float32, -k, k)
        b_hh = jax.random.uniform(k4, (4 * hidden,), jnp.float32, -k, k)
        # pre-transpose weights, combine biases (math is identical)
        params["layers"].append((w_ih.T, w_hh.T, (b_ih + b_hh)[None, :]))
    key, k1, k2 = jax.random.split(key, 3)
    kf = 1.0 / jnp.sqrt(hidden)
    w_fc = jax.random.uniform(k1, (num_classes, hidden), jnp.float32, -kf, kf)
    b_fc = jax.random.uniform(k2, (num_classes,), jnp.float32, -kf, kf)
    params["fc"] = (w_fc.T, b_fc[None, :])
    return params


# --------------------------- Pure-JAX reference ----------------------------- #

def lstm_reference(x, params):
    B = x.shape[0]
    seq = jnp.transpose(x, (1, 0, 2)).astype(jnp.float32)
    h_finals = []
    for (w_ih_t, w_hh_t, b) in params["layers"]:
        H = w_hh_t.shape[0]
        h = jnp.zeros((B, H), jnp.float32)
        c = jnp.zeros((B, H), jnp.float32)
        outs = []
        for t in range(seq.shape[0]):
            gates = seq[t] @ w_ih_t + h @ w_hh_t + b
            i = jax.nn.sigmoid(gates[:, 0 * H:1 * H])
            f = jax.nn.sigmoid(gates[:, 1 * H:2 * H])
            g = jnp.tanh(gates[:, 2 * H:3 * H])
            o = jax.nn.sigmoid(gates[:, 3 * H:4 * H])
            c = f * c + i * g
            h = o * jnp.tanh(c)
            outs.append(h)
        seq = jnp.stack(outs, axis=0)
        h_finals.append(h)
    h_out = jnp.concatenate(h_finals, axis=0)
    w_fc_t, b_fc = params["fc"]
    return h_out @ w_fc_t + b_fc


# --------------------------------- Main ------------------------------------ #

if __name__ == "__main__":
    # num_classes (=output_dimension)=3, input_variables=4, hidden_size=32,
    # num_layers=2, seq_length=8, batch=2
    B, T, D_IN, HIDDEN, NUM_LAYERS, NUM_CLASSES = 2, 8, 4, 32, 2, 3

    key = jax.random.PRNGKey(0)
    key, kx = jax.random.split(key)
    x = jax.random.normal(kx, (B, T, D_IN), jnp.float32)
    params = init_params(key, D_IN, HIDDEN, NUM_LAYERS, NUM_CLASSES)

    fwd = jax.jit(functools.partial(lstm_forward, params=params))
    out = fwd(x)
    jax.block_until_ready(out)

    ref = lstm_reference(x, params)
    assert out.shape == (NUM_LAYERS * B, NUM_CLASSES), out.shape
    assert jnp.allclose(out, ref, atol=1e-5, rtol=1e-5), "mismatch vs reference"

    print("KERNEL_OK")
</pallas_src>

<mosaic_0001>
module attributes {stable_mosaic.version = 11 : i64} {
  func.func @kernel(%arg0: memref<64x4xf32, #tpu.memory_space<vmem>>, %arg1: memref<4x128xf32, #tpu.memory_space<vmem>>, %arg2: memref<32x128xf32, #tpu.memory_space<vmem>>, %arg3: memref<1x128xf32, #tpu.memory_space<vmem>>, %arg4: memref<32x128xf32, #tpu.memory_space<vmem>>, %arg5: memref<32x128xf32, #tpu.memory_space<vmem>>, %arg6: memref<1x128xf32, #tpu.memory_space<vmem>>, %arg7: memref<32x3xf32, #tpu.memory_space<vmem>>, %arg8: memref<1x3xf32, #tpu.memory_space<vmem>>, %arg9: memref<16x3xf32, #tpu.memory_space<vmem>>, %arg10: memref<64x32xf32, #tpu.memory_space<vmem>>, %arg11: memref<64x128xf32, #tpu.memory_space<vmem>>, %arg12: memref<16x32xf32, #tpu.memory_space<vmem>>) attributes {dimension_semantics = [], scalar_prefetch = 0 : i64, scratch_operands = 3 : i64, tpu.core_type = #tpu.core_type<tc>} {
    %c0 = arith.constant 0 : index
    %c0_0 = arith.constant 0 : index
    %0 = vector.load %arg0[%c0, %c0_0] : memref<64x4xf32, #tpu.memory_space<vmem>>, vector<64x4xf32>
    %c0_1 = arith.constant 0 : index
    %c0_2 = arith.constant 0 : index
    %1 = vector.load %arg1[%c0_1, %c0_2] : memref<4x128xf32, #tpu.memory_space<vmem>>, vector<4x128xf32>
    %cst = arith.constant dense<0.000000e+00> : vector<64x128xf32>
    %2 = tpu.matmul %0, %1, %cst {dimension_numbers = #tpu.dot_dimension_numbers<[1], [0], [0], [1], [0, 0, 1, 1], [], []>} : vector<64x4xf32>, vector<4x128xf32>, vector<64x128xf32> -> vector<64x128xf32>
    %c0_3 = arith.constant 0 : index
    %c0_4 = arith.constant 0 : index
    %3 = vector.load %arg3[%c0_3, %c0_4] : memref<1x128xf32, #tpu.memory_space<vmem>>, vector<1x128xf32>
    %4 = vector.broadcast %3 : vector<1x128xf32> to vector<64x128xf32>
    %5 = arith.addf %2, %4 : vector<64x128xf32>
    %c0_5 = arith.constant 0 : index
    %c0_6 = arith.constant 0 : index
    %6 = vector.load %arg11[%c0_5, %c0_6] : memref<64x128xf32, #tpu.memory_space<vmem>>, vector<64x128xf32>
    tpu.vector_store %arg11[%c0_5, %c0_6], %5 {strides = array<i32>} : memref<64x128xf32, #tpu.memory_space<vmem>>, vector<64x128xf32>,
    %c0_7 = arith.constant 0 : index
    %c0_8 = arith.constant 0 : index
    %7 = vector.load %arg2[%c0_7, %c0_8] : memref<32x128xf32, #tpu.memory_space<vmem>>, vector<32x128xf32>
    %cst_9 = arith.constant 0.000000e+00 : f32
    %8 = vector.broadcast %cst_9 : f32 to vector<8x32xf32>
    %cst_10 = arith.constant 0.000000e+00 : f32
    %9 = vector.broadcast %cst_10 : f32 to vector<8x32xf32>
    %c0_i32 = arith.constant 0 : i32
    %c8_i32 = arith.constant 8 : i32
    %10 = arith.muli %c0_i32, %c8_i32 : i32
    %11 = tpu.assume_multiple %10, 8 : i32
    %cst_11 = arith.constant dense<0.000000e+00> : vector<8x128xf32>
    %12 = tpu.matmul %8, %7, %cst_11 {dimension_numbers = #tpu.dot_dimension_numbers<[1], [0], [0], [1], [0, 0, 1, 1], [], []>} : vector<8x32xf32>, vector<32x128xf32>, vector<8x128xf32> -> vector<8x128xf32>
    %13 = arith.index_cast %11 : i32 to index
    %c0_12 = arith.constant 0 : index
    %14 = vector.load %arg11[%13, %c0_12] : memref<64x128xf32, #tpu.memory_space<vmem>>, vector<8x128xf32>
    %15 = arith.addf %12, %14 : vector<8x128xf32>
    %16 = math.tanh %15 : vector<8x128xf32>
    %17 = vector.extract_strided_slice %16 {offsets = [0, 0], sizes = [8, 32], strides = [1, 1]} : vector<8x128xf32> to vector<8x32xf32>
    %cst_13 = arith.constant 5.000000e-01 : f32
    %18 = vector.broadcast %cst_13 : f32 to vector<8x32xf32>
    %19 = arith.mulf %18, %17 : vector<8x32xf32>
    %cst_14 = arith.constant 5.000000e-01 : f32
    %20 = vector.broadcast %cst_14 : f32 to vector<8x32xf32>
    %21 = arith.addf %20, %19 : vector<8x32xf32>
    %22 = vector.extract_strided_slice %16 {offsets = [0, 32], sizes = [8, 32], strides = [1, 1]} : vector<8x128xf32> to vector<8x32xf32>
    %cst_15 = arith.constant 5.000000e-01 : f32
    %23 = vector.broadcast %cst_15 : f32 to vector<8x32xf32>
    %24 = arith.mulf %23, %22 : vector<8x32xf32>
    %cst_16 = arith.constant 5.000000e-01 : f32
    %25 = vector.broadcast %cst_16 : f32 to vector<8x32xf32>
    %26 = arith.addf %25, %24 : vector<8x32xf32>
    %27 = vector.extract_strided_slice %16 {offsets = [0, 64], sizes = [8, 32], strides = [1, 1]} : vector<8x128xf32> to vector<8x32xf32>
    %28 = vector.extract_strided_slice %16 {offsets = [0, 96], sizes = [8, 32], strides = [1, 1]} : vector<8x128xf32> to vector<8x32xf32>
    %cst_17 = arith.constant 5.000000e-01 : f32
    %29 = vector.broadcast %cst_17 : f32 to vector<8x32xf32>
    %30 = arith.mulf %29, %28 : vector<8x32xf32>
    %cst_18 = arith.constant 5.000000e-01 : f32
    %31 = vector.broadcast %cst_18 : f32 to vector<8x32xf32>
    %32 = arith.addf %31, %30 : vector<8x32xf32>
    %33 = arith.mulf %26, %9 : vector<8x32xf32>
    %34 = arith.mulf %21, %27 : vector<8x32xf32>
    %35 = arith.addf %33, %34 : vector<8x32xf32>
    %36 = math.tanh %35 : vector<8x32xf32>
    %37 = arith.mulf %32, %36 : vector<8x32xf32>
    %38 = arith.index_cast %11 : i32 to index
    %c0_19 = arith.constant 0 : index
    %39 = vector.load %arg10[%38, %c0_19] : memref<64x32xf32, #tpu.memory_space<vmem>>, vector<8x32xf32>
    tpu.vector_store %arg10[%38, %c0_19], %37 {strides = array<i32>} : memref<64x32xf32, #tpu.memory_space<vmem>>, vector<8x32xf32>,
    %c1_i32 = arith.constant 1 : i32
    %c8_i32_20 = arith.constant 8 : i32
    %40 = arith.muli %c1_i32, %c8_i32_20 : i32
    %41 = tpu.assume_multiple %40, 8 : i32
    %cst_21 = arith.constant dense<0.000000e+00> : vector<8x128xf32>
    %42 = tpu.matmul %37, %7, %cst_21 {dimension_numbers = #tpu.dot_dimension_numbers<[1], [0], [0], [1], [0, 0, 1, 1], [], []>} : vector<8x32xf32>, vector<32x128xf32>, vector<8x128xf32> -> vector<8x128xf32>
    %43 = arith.index_cast %41 : i32 to index
    %c0_22 = arith.constant 0 : index
    %44 = vector.load %arg11[%43, %c0_22] : memref<64x128xf32, #tpu.memory_space<vmem>>, vector<8x128xf32>
    %45 = arith.addf %42, %44 : vector<8x128xf32>
    %46 = math.tanh %45 : vector<8x128xf32>
    %47 = vector.extract_strided_slice %46 {offsets = [0, 0], sizes = [8, 32], strides = [1, 1]} : vector<8x128xf32> to vector<8x32xf32>
    %cst_23 = arith.constant 5.000000e-01 : f32
    %48 = vector.broadcast %cst_23 : f32 to vector<8x32xf32>
    %49 = arith.mulf %48, %47 : vector<8x32xf32>
    %cst_24 = arith.constant 5.000000e-01 : f32
    %50 = vector.broadcast %cst_24 : f32 to vector<8x32xf32>
    %51 = arith.addf %50, %49 : vector<8x32xf32>
    %52 = vector.extract_strided_slice %46 {offsets = [0, 32], sizes = [8, 32], strides = [1, 1]} : vector<8x128xf32> to vector<8x32xf32>
    %cst_25 = arith.constant 5.000000e-01 : f32
    %53 = vector.broadcast %cst_25 : f32 to vector<8x32xf32>
    %54 = arith.mulf %53, %52 : vector<8x32xf32>
    %cst_26 = arith.constant 5.000000e-01 : f32
    %55 = vector.broadcast %cst_26 : f32 to vector<8x32xf32>
    %56 = arith.addf %55, %54 : vector<8x32xf32>
    %57 = vector.extract_strided_slice %46 {offsets = [0, 64], sizes = [8, 32], strides = [1, 1]} : vector<8x128xf32> to vector<8x32xf32>
    %58 = vector.extract_strided_slice %46 {offsets = [0, 96], sizes = [8, 32], strides = [1, 1]} : vector<8x128xf32> to vector<8x32xf32>
    %cst_27 = arith.constant 5.000000e-01 : f32
    %59 = vector.broadcast %cst_27 : f32 to vector<8x32xf32>
    %60 = arith.mulf %59, %58 : vector<8x32xf32>
    %cst_28 = arith.constant 5.000000e-01 : f32
    %61 = vector.broadcast %cst_28 : f32 to vector<8x32xf32>
    %62 = arith.addf %61, %60 : vector<8x32xf32>
    %63 = arith.mulf %56, %35 : vector<8x32xf32>
    %64 = arith.mulf %51, %57 : vector<8x32xf32>
    %65 = arith.addf %63, %64 : vector<8x32xf32>
    %66 = math.tanh %65 : vector<8x32xf32>
    %67 = arith.mulf %62, %66 : vector<8x32xf32>
    %68 = arith.index_cast %41 : i32 to index
    %c0_29 = arith.constant 0 : index
    %69 = vector.load %arg10[%68, %c0_29] : memref<64x32xf32, #tpu.memory_space<vmem>>, vector<8x32xf32>
    tpu.vector_store %arg10[%68, %c0_29], %67 {strides = array<i32>} : memref<64x32xf32, #tpu.memory_space<vmem>>, vector<8x32xf32>,
    %c2_i32 = arith.constant 2 : i32
    %c8_i32_30 = arith.constant 8 : i32
    %70 = arith.muli %c2_i32, %c8_i32_30 : i32
    %71 = tpu.assume_multiple %70, 8 : i32
    %cst_31 = arith.constant dense<0.000000e+00> : vector<8x128xf32>
    %72 = tpu.matmul %67, %7, %cst_31 {dimension_numbers = #tpu.dot_dimension_numbers<[1], [0], [0], [1], [0, 0, 1, 1], [], []>} : vector<8x32xf32>, vector<32x128xf32>, vector<8x128xf32> -> vector<8x128xf32>
    %73 = arith.index_cast %71 : i32 to index
    %c0_32 = arith.constant 0 : index
    %74 = vector.load %arg11[%73, %c0_32] : memref<64x128xf32, #tpu.memory_space<vmem>>, vector<8x128xf32>
    %75 = arith.addf %72, %74 : vector<8x128xf32>
    %76 = math.tanh %75 : vector<8x128xf32>
    %77 = vector.extract_strided_slice %76 {offsets = [0, 0], sizes = [8, 32], strides = [1, 1]} : vector<8x128xf32> to vector<8x32xf32>
    %cst_33 = arith.constant 5.000000e-01 : f32
    %78 = vector.broadcast %cst_33 : f32 to vector<8x32xf32>
    %79 = arith.mulf %78, %77 : vector<8x32xf32>
    %cst_34 = arith.constant 5.000000e-01 : f32
    %80 = vector.broadcast %cst_34 : f32 to vector<8x32xf32>
    %81 = arith.addf %80, %79 : vector<8x32xf32>
    %82 = vector.extract_strided_slice %76 {offsets = [0, 32], sizes = [8, 32], strides = [1, 1]} : vector<8x128xf32> to vector<8x32xf32>
    %cst_35 = arith.constant 5.000000e-01 : f32
    %83 = vector.broadcast %cst_35 : f32 to vector<8x32xf32>
    %84 = arith.mulf %83, %82 : vector<8x32xf32>
    %cst_36 = arith.constant 5.000000e-01 : f32
    %85 = vector.broadcast %cst_36 : f32 to vector<8x32xf32>
    %86 = arith.addf %85, %84 : vector<8x32xf32>
    %87 = vector.extract_strided_slice %76 {offsets = [0, 64], sizes = [8, 32], strides = [1, 1]} : vector<8x128xf32> to vector<8x32xf32>
    %88 = vector.extract_strided_slice %76 {offsets = [0, 96], sizes = [8, 32], strides = [1, 1]} : vector<8x128xf32> to vector<8x32xf32>
    %cst_37 = arith.constant 5.000000e-01 : f32
    %89 = vector.broadcast %cst_37 : f32 to vector<8x32xf32>
    %90 = arith.mulf %89, %88 : vector<8x32xf32>
    %cst_38 = arith.constant 5.000000e-01 : f32
    %91 = vector.broadcast %cst_38 : f32 to vector<8x32xf32>
    %92 = arith.addf %91, %90 : vector<8x32xf32>
    %93 = arith.mulf %86, %65 : vector<8x32xf32>
    %94 = arith.mulf %81, %87 : vector<8x32xf32>
    %95 = arith.addf %93, %94 : vector<8x32xf32>
    %96 = math.tanh %95 : vector<8x32xf32>
    %97 = arith.mulf %92, %96 : vector<8x32xf32>
    %98 = arith.index_cast %71 : i32 to index
    %c0_39 = arith.constant 0 : index
    %99 = vector.load %arg10[%98, %c0_39] : memref<64x32xf32, #tpu.memory_space<vmem>>, vector<8x32xf32>
    tpu.vector_store %arg10[%98, %c0_39], %97 {strides = array<i32>} : memref<64x32xf32, #tpu.memory_space<vmem>>, vector<8x32xf32>,
    %c3_i32 = arith.constant 3 : i32
    %c8_i32_40 = arith.constant 8 : i32
    %100 = arith.muli %c3_i32, %c8_i32_40 : i32
    %101 = tpu.assume_multiple %100, 8 : i32
    %cst_41 = arith.constant dense<0.000000e+00> : vector<8x128xf32>
    %102 = tpu.matmul %97, %7, %cst_41 {dimension_numbers = #tpu.dot_dimension_numbers<[1], [0], [0], [1], [0, 0, 1, 1], [], []>} : vector<8x32xf32>, vector<32x128xf32>, vector<8x128xf32> -> vector<8x128xf32>
    %103 = arith.index_cast %101 : i32 to index
    %c0_42 = arith.constant 0 : index
    %104 = vector.load %arg11[%103, %c0_42] : memref<64x128xf32, #tpu.memory_space<vmem>>, vector<8x128xf32>
    %105 = arith.addf %102, %104 : vector<8x128xf32>
    %106 = math.tanh %105 : vector<8x128xf32>
    %107 = vector.extract_strided_slice %106 {offsets = [0, 0], sizes = [8, 32], strides = [1, 1]} : vector<8x128xf32> to vector<8x32xf32>
    %cst_43 = arith.constant 5.000000e-01 : f32
    %108 = vector.broadcast %cst_43 : f32 to vector<8x32xf32>
    %109 = arith.mulf %108, %107 : vector<8x32xf32>
    %cst_44 = arith.constant 5.000000e-01 : f32
    %110 = vector.broadcast %cst_44 : f32 to vector<8x32xf32>
    %111 = arith.addf %110, %109 : vector<8x32xf32>
    %112 = vector.extract_strided_slice %106 {offsets = [0, 32], sizes = [8, 32], strides = [1, 1]} : vector<8x128xf32> to vector<8x32xf32>
    %cst_45 = arith.constant 5.000000e-01 : f32
    %113 = vector.broadcast %cst_45 : f32 to vector<8x32xf32>
    %114 = arith.mulf %113, %112 : vector<8x32xf32>
    %cst_46 = arith.constant 5.000000e-01 : f32
    %115 = vector.broadcast %cst_46 : f32 to vector<8x32xf32>
    %116 = arith.addf %115, %114 : vector<8x32xf32>
    %117 = vector.extract_strided_slice %106 {offsets = [0, 64], sizes = [8, 32], strides = [1, 1]} : vector<8x128xf32> to vector<8x32xf32>
    %118 = vector.extract_strided_slice %106 {offsets = [0, 96], sizes = [8, 32], strides = [1, 1]} : vector<8x128xf32> to vector<8x32xf32>
    %cst_47 = arith.constant 5.000000e-01 : f32
    %119 = vector.broadcast %cst_47 : f32 to vector<8x32xf32>
    %120 = arith.mulf %119, %118 : vector<8x32xf32>
    %cst_48 = arith.constant 5.000000e-01 : f32
    %121 = vector.broadcast %cst_48 : f32 to vector<8x32xf32>
    %122 = arith.addf %121, %120 : vector<8x32xf32>
    %123 = arith.mulf %116, %95 : vector<8x32xf32>
    %124 = arith.mulf %111, %117 : vector<8x32xf32>
    %125 = arith.addf %123, %124 : vector<8x32xf32>
    %126 = math.tanh %125 : vector<8x32xf32>
    %127 = arith.mulf %122, %126 : vector<8x32xf32>
    %128 = arith.index_cast %101 : i32 to index
    %c0_49 = arith.constant 0 : index
    %129 = vector.load %arg10[%128, %c0_49] : memref<64x32xf32, #tpu.memory_space<vmem>>, vector<8x32xf32>
    tpu.vector_store %arg10[%128, %c0_49], %127 {strides = array<i32>} : memref<64x32xf32, #tpu.memory_space<vmem>>, vector<8x32xf32>,
    %c4_i32 = arith.constant 4 : i32
    %c8_i32_50 = arith.constant 8 : i32
    %130 = arith.muli %c4_i32, %c8_i32_50 : i32
    %131 = tpu.assume_multiple %130, 8 : i32
    %cst_51 = arith.constant dense<0.000000e+00> : vector<8x128xf32>
    %132 = tpu.matmul %127, %7, %cst_51 {dimension_numbers = #tpu.dot_dimension_numbers<[1], [0], [0], [1], [0, 0, 1, 1], [], []>} : vector<8x32xf32>, vector<32x128xf32>, vector<8x128xf32> -> vector<8x128xf32>
    %133 = arith.index_cast %131 : i32 to index
    %c0_52 = arith.constant 0 : index
    %134 = vector.load %arg11[%133, %c0_52] : memref<64x128xf32, #tpu.memory_space<vmem>>, vector<8x128xf32>
    %135 = arith.addf %132, %134 : vector<8x128xf32>
    %136 = math.tanh %135 : vector<8x128xf32>
    %137 = vector.extract_strided_slice %136 {offsets = [0, 0], sizes = [8, 32], strides = [1, 1]} : vector<8x128xf32> to vector<8x32xf32>
    %cst_53 = arith.constant 5.000000e-01 : f32
    %138 = vector.broadcast %cst_53 : f32 to vector<8x32xf32>
    %139 = arith.mulf %138, %137 : vector<8x32xf32>
    %cst_54 = arith.constant 5.000000e-01 : f32
    %140 = vector.broadcast %cst_54 : f32 to vector<8x32xf32>
    %141 = arith.addf %140, %139 : vector<8x32xf32>
    %142 = vector.extract_strided_slice %136 {offsets = [0, 32], sizes = [8, 32], strides = [1, 1]} : vector<8x128xf32> to vector<8x32xf32>
    %cst_55 = arith.constant 5.000000e-01 : f32
    %143 = vector.broadcast %cst_55 : f32 to vector<8x32xf32>
    %144 = arith.mulf %143, %142 : vector<8x32xf32>
    %cst_56 = arith.constant 5.000000e-01 : f32
    %145 = vector.broadcast %cst_56 : f32 to vector<8x32xf32>
    %146 = arith.addf %145, %144 : vector<8x32xf32>
    %147 = vector.extract_strided_slice %136 {offsets = [0, 64], sizes = [8, 32], strides = [1, 1]} : vector<8x128xf32> to vector<8x32xf32>
    %148 = vector.extract_strided_slice %136 {offsets = [0, 96], sizes = [8, 32], strides = [1, 1]} : vector<8x128xf32> to vector<8x32xf32>
    %cst_57 = arith.constant 5.000000e-01 : f32
    %149 = vector.broadcast %cst_57 : f32 to vector<8x32xf32>
    %150 = arith.mulf %149, %148 : vector<8x32xf32>
    %cst_58 = arith.constant 5.000000e-01 : f32
    %151 = vector.broadcast %cst_58 : f32 to vector<8x32xf32>
    %152 = arith.addf %151, %150 : vector<8x32xf32>
    %153 = arith.mulf %146, %125 : vector<8x32xf32>
    %154 = arith.mulf %141, %147 : vector<8x32xf32>
    %155 = arith.addf %153, %154 : vector<8x32xf32>
    %156 = math.tanh %155 : vector<8x32xf32>
    %157 = arith.mulf %152, %156 : vector<8x32xf32>
    %158 = arith.index_cast %131 : i32 to index
    %c0_59 = arith.constant 0 : index
    %159 = vector.load %arg10[%158, %c0_59] : memref<64x32xf32, #tpu.memory_space<vmem>>, vector<8x32xf32>
    tpu.vector_store %arg10[%158, %c0_59], %157 {strides = array<i32>} : memref<64x32xf32, #tpu.memory_space<vmem>>, vector<8x32xf32>,
    %c5_i32 = arith.constant 5 : i32
    %c8_i32_60 = arith.constant 8 : i32
    %160 = arith.muli %c5_i32, %c8_i32_60 : i32
    %161 = tpu.assume_multiple %160, 8 : i32
    %cst_61 = arith.constant dense<0.000000e+00> : vector<8x128xf32>
    %162 = tpu.matmul %157, %7, %cst_61 {dimension_numbers = #tpu.dot_dimension_numbers<[1], [0], [0], [1], [0, 0, 1, 1], [], []>} : vector<8x32xf32>, vector<32x128xf32>, vector<8x128xf32> -> vector<8x128xf32>
    %163 = arith.index_cast %161 : i32 to index
    %c0_62 = arith.constant 0 : index
    %164 = vector.load %arg11[%163, %c0_62] : memref<64x128xf32, #tpu.memory_space<vmem>>, vector<8x128xf32>
    %165 = arith.addf %162, %164 : vector<8x128xf32>
    %166 = math.tanh %165 : vector<8x128xf32>
    %167 = vector.extract_strided_slice %166 {offsets = [0, 0], sizes = [8, 32], strides = [1, 1]} : vector<8x128xf32> to vector<8x32xf32>
    %cst_63 = arith.constant 5.000000e-01 : f32
    %168 = vector.broadcast %cst_63 : f32 to vector<8x32xf32>
    %169 = arith.mulf %168, %167 : vector<8x32xf32>
    %cst_64 = arith.constant 5.000000e-01 : f32
    %170 = vector.broadcast %cst_64 : f32 to vector<8x32xf32>
    %171 = arith.addf %170, %169 : vector<8x32xf32>
    %172 = vector.extract_strided_slice %166 {offsets = [0, 32], sizes = [8, 32], strides = [1, 1]} : vector<8x128xf32> to vector<8x32xf32>
    %cst_65 = arith.constant 5.000000e-01 : f32
    %173 = vector.broadcast %cst_65 : f32 to vector<8x32xf32>
    %174 = arith.mulf %173, %172 : vector<8x32xf32>
    %cst_66 = arith.constant 5.000000e-01 : f32
    %175 = vector.broadcast %cst_66 : f32 to vector<8x32xf32>
    %176 = arith.addf %175, %174 : vector<8x32xf32>
    %177 = vector.extract_strided_slice %166 {offsets = [0, 64], sizes = [8, 32], strides = [1, 1]} : vector<8x128xf32> to vector<8x32xf32>
    %178 = vector.extract_strided_slice %166 {offsets = [0, 96], sizes = [8, 32], strides = [1, 1]} : vector<8x128xf32> to vector<8x32xf32>
    %cst_67 = arith.constant 5.000000e-01 : f32
    %179 = vector.broadcast %cst_67 : f32 to vector<8x32xf32>
    %180 = arith.mulf %179, %178 : vector<8x32xf32>
    %cst_68 = arith.constant 5.000000e-01 : f32
    %181 = vector.broadcast %cst_68 : f32 to vector<8x32xf32>
    %182 = arith.addf %181, %180 : vector<8x32xf32>
    %183 = arith.mulf %176, %155 : vector<8x32xf32>
    %184 = arith.mulf %171, %177 : vector<8x32xf32>
    %185 = arith.addf %183, %184 : vector<8x32xf32>
    %186 = math.tanh %185 : vector<8x32xf32>
    %187 = arith.mulf %182, %186 : vector<8x32xf32>
    %188 = arith.index_cast %161 : i32 to index
    %c0_69 = arith.constant 0 : index
    %189 = vector.load %arg10[%188, %c0_69] : memref<64x32xf32, #tpu.memory_space<vmem>>, vector<8x32xf32>
    tpu.vector_store %arg10[%188, %c0_69], %187 {strides = array<i32>} : memref<64x32xf32, #tpu.memory_space<vmem>>, vector<8x32xf32>,
    %c6_i32 = arith.constant 6 : i32
    %c8_i32_70 = arith.constant 8 : i32
    %190 = arith.muli %c6_i32, %c8_i32_70 : i32
    %191 = tpu.assume_multiple %190, 8 : i32
    %cst_71 = arith.constant dense<0.000000e+00> : vector<8x128xf32>
    %192 = tpu.matmul %187, %7, %cst_71 {dimension_numbers = #tpu.dot_dimension_numbers<[1], [0], [0], [1], [0, 0, 1, 1], [], []>} : vector<8x32xf32>, vector<32x128xf32>, vector<8x128xf32> -> vector<8x128xf32>
    %193 = arith.index_cast %191 : i32 to index
    %c0_72 = arith.constant 0 : index
    %194 = vector.load %arg11[%193, %c0_72] : memref<64x128xf32, #tpu.memory_space<vmem>>, vector<8x128xf32>
    %195 = arith.addf %192, %194 : vector<8x128xf32>
    %196 = math.tanh %195 : vector<8x128xf32>
    %197 = vector.extract_strided_slice %196 {offsets = [0, 0], sizes = [8, 32], strides = [1, 1]} : vector<8x128xf32> to vector<8x32xf32>
    %cst_73 = arith.constant 5.000000e-01 : f32
    %198 = vector.broadcast %cst_73 : f32 to vector<8x32xf32>
    %199 = arith.mulf %198, %197 : vector<8x32xf32>
    %cst_74 = arith.constant 5.000000e-01 : f32
    %200 = vector.broadcast %cst_74 : f32 to vector<8x32xf32>
    %201 = arith.addf %200, %199 : vector<8x32xf32>
    %202 = vector.extract_strided_slice %196 {offsets = [0, 32], sizes = [8, 32], strides = [1, 1]} : vector<8x128xf32> to vector<8x32xf32>
    %cst_75 = arith.constant 5.000000e-01 : f32
    %203 = vector.broadcast %cst_75 : f32 to vector<8x32xf32>
    %204 = arith.mulf %203, %202 : vector<8x32xf32>
    %cst_76 = arith.constant 5.000000e-01 : f32
    %205 = vector.broadcast %cst_76 : f32 to vector<8x32xf32>
    %206 = arith.addf %205, %204 : vector<8x32xf32>
    %207 = vector.extract_strided_slice %196 {offsets = [0, 64], sizes = [8, 32], strides = [1, 1]} : vector<8x128xf32> to vector<8x32xf32>
    %208 = vector.extract_strided_slice %196 {offsets = [0, 96], sizes = [8, 32], strides = [1, 1]} : vector<8x128xf32> to vector<8x32xf32>
    %cst_77 = arith.constant 5.000000e-01 : f32
    %209 = vector.broadcast %cst_77 : f32 to vector<8x32xf32>
    %210 = arith.mulf %209, %208 : vector<8x32xf32>
    %cst_78 = arith.constant 5.000000e-01 : f32
    %211 = vector.broadcast %cst_78 : f32 to vector<8x32xf32>
    %212 = arith.addf %211, %210 : vector<8x32xf32>
    %213 = arith.mulf %206, %185 : vector<8x32xf32>
    %214 = arith.mulf %201, %207 : vector<8x32xf32>
    %215 = arith.addf %213, %214 : vector<8x32xf32>
    %216 = math.tanh %215 : vector<8x32xf32>
    %217 = arith.mulf %212, %216 : vector<8x32xf32>
    %218 = arith.index_cast %191 : i32 to index
    %c0_79 = arith.constant 0 : index
    %219 = vector.load %arg10[%218, %c0_79] : memref<64x32xf32, #tpu.memory_space<vmem>>, vector<8x32xf32>
    tpu.vector_store %arg10[%218, %c0_79], %217 {strides = array<i32>} : memref<64x32xf32, #tpu.memory_space<vmem>>, vector<8x32xf32>,
    %c7_i32 = arith.constant 7 : i32
    %c8_i32_80 = arith.constant 8 : i32
    %220 = arith.muli %c7_i32, %c8_i32_80 : i32
    %221 = tpu.assume_multiple %220, 8 : i32
    %cst_81 = arith.constant dense<0.000000e+00> : vector<8x128xf32>
    %222 = tpu.matmul %217, %7, %cst_81 {dimension_numbers = #tpu.dot_dimension_numbers<[1], [0], [0], [1], [0, 0, 1, 1], [], []>} : vector<8x32xf32>, vector<32x128xf32>, vector<8x128xf32> -> vector<8x128xf32>
    %223 = arith.index_cast %221 : i32 to index
    %c0_82 = arith.constant 0 : index
    %224 = vector.load %arg11[%223, %c0_82] : memref<64x128xf32, #tpu.memory_space<vmem>>, vector<8x128xf32>
    %225 = arith.addf %222, %224 : vector<8x128xf32>
    %226 = math.tanh %225 : vector<8x128xf32>
    %227 = vector.extract_strided_slice %226 {offsets = [0, 0], sizes = [8, 32], strides = [1, 1]} : vector<8x128xf32> to vector<8x32xf32>
    %cst_83 = arith.constant 5.000000e-01 : f32
    %228 = vector.broadcast %cst_83 : f32 to vector<8x32xf32>
    %229 = arith.mulf %228, %227 : vector<8x32xf32>
    %cst_84 = arith.constant 5.000000e-01 : f32
    %230 = vector.broadcast %cst_84 : f32 to vector<8x32xf32>
    %231 = arith.addf %230, %229 : vector<8x32xf32>
    %232 = vector.extract_strided_slice %226 {offsets = [0, 32], sizes = [8, 32], strides = [1, 1]} : vector<8x128xf32> to vector<8x32xf32>
    %cst_85 = arith.constant 5.000000e-01 : f32
    %233 = vector.broadcast %cst_85 : f32 to vector<8x32xf32>
    %234 = arith.mulf %233, %232 : vector<8x32xf32>
    %cst_86 = arith.constant 5.000000e-01 : f32
    %235 = vector.broadcast %cst_86 : f32 to vector<8x32xf32>
    %236 = arith.addf %235, %234 : vector<8x32xf32>
    %237 = vector.extract_strided_slice %226 {offsets = [0, 64], sizes = [8, 32], strides = [1, 1]} : vector<8x128xf32> to vector<8x32xf32>
    %238 = vector.extract_strided_slice %226 {offsets = [0, 96], sizes = [8, 32], strides = [1, 1]} : vector<8x128xf32> to vector<8x32xf32>
    %cst_87 = arith.constant 5.000000e-01 : f32
    %239 = vector.broadcast %cst_87 : f32 to vector<8x32xf32>
    %240 = arith.mulf %239, %238 : vector<8x32xf32>
    %cst_88 = arith.constant 5.000000e-01 : f32
    %241 = vector.broadcast %cst_88 : f32 to vector<8x32xf32>
    %242 = arith.addf %241, %240 : vector<8x32xf32>
    %243 = arith.mulf %236, %215 : vector<8x32xf32>
    %244 = arith.mulf %231, %237 : vector<8x32xf32>
    %245 = arith.addf %243, %244 : vector<8x32xf32>
    %246 = math.tanh %245 : vector<8x32xf32>
    %247 = arith.mulf %242, %246 : vector<8x32xf32>
    %248 = arith.index_cast %221 : i32 to index
    %c0_89 = arith.constant 0 : index
    %249 = vector.load %arg10[%248, %c0_89] : memref<64x32xf32, #tpu.memory_space<vmem>>, vector<8x32xf32>
    tpu.vector_store %arg10[%248, %c0_89], %247 {strides = array<i32>} : memref<64x32xf32, #tpu.memory_space<vmem>>, vector<8x32xf32>,
    %c8_i32_90 = arith.constant 8 : i32
    %c0_91 = arith.constant 0 : index
    %c0_92 = arith.constant 0 : index
    %250 = vector.load %arg12[%c0_91, %c0_92] : memref<16x32xf32, #tpu.memory_space<vmem>>, vector<8x32xf32>
    tpu.vector_store %arg12[%c0_91, %c0_92], %247 {strides = array<i32>} : memref<16x32xf32, #tpu.memory_space<vmem>>, vector<8x32xf32>,
    %c0_93 = arith.constant 0 : index
    %c0_94 = arith.constant 0 : index
    %251 = vector.load %arg10[%c0_93, %c0_94] : memref<64x32xf32, #tpu.memory_space<vmem>>, vector<64x32xf32>
    %c0_95 = arith.constant 0 : index
    %c0_96 = arith.constant 0 : index
    %252 = vector.load %arg4[%c0_95, %c0_96] : memref<32x128xf32, #tpu.memory_space<vmem>>, vector<32x128xf32>
    %cst_97 = arith.constant dense<0.000000e+00> : vector<64x128xf32>
    %253 = tpu.matmul %251, %252, %cst_97 {dimension_numbers = #tpu.dot_dimension_numbers<[1], [0], [0], [1], [0, 0, 1, 1], [], []>} : vector<64x32xf32>, vector<32x128xf32>, vector<64x128xf32> -> vector<64x128xf32>
    %c0_98 = arith.constant 0 : index
    %c0_99 = arith.constant 0 : index
    %254 = vector.load %arg6[%c0_98, %c0_99] : memref<1x128xf32, #tpu.memory_space<vmem>>, vector<1x128xf32>
    %255 = vector.broadcast %254 : vector<1x128xf32> to vector<64x128xf32>
    %256 = arith.addf %253, %255 : vector<64x128xf32>
    %c0_100 = arith.constant 0 : index
    %c0_101 = arith.constant 0 : index
    %257 = vector.load %arg11[%c0_100, %c0_101] : memref<64x128xf32, #tpu.memory_space<vmem>>, vector<64x128xf32>
    tpu.vector_store %arg11[%c0_100, %c0_101], %256 {strides = array<i32>} : memref<64x128xf32, #tpu.memory_space<vmem>>, vector<64x128xf32>,
    %c0_102 = arith.constant 0 : index
    %c0_103 = arith.constant 0 : index
    %258 = vector.load %arg5[%c0_102, %c0_103] : memref<32x128xf32, #tpu.memory_space<vmem>>, vector<32x128xf32>
    %cst_104 = arith.constant 0.000000e+00 : f32
    %259 = vector.broadcast %cst_104 : f32 to vector<8x32xf32>
    %cst_105 = arith.constant 0.000000e+00 : f32
    %260 = vector.broadcast %cst_105 : f32 to vector<8x32xf32>
    %c0_i32_106 = arith.constant 0 : i32
    %c8_i32_107 = arith.constant 8 : i32
    %261 = arith.muli %c0_i32_106, %c8_i32_107 : i32
    %262 = tpu.assume_multiple %261, 8 : i32
    %cst_108 = arith.constant dense<0.000000e+00> : vector<8x128xf32>
    %263 = tpu.matmul %259, %258, %cst_108 {dimension_numbers = #tpu.dot_dimension_numbers<[1], [0], [0], [1], [0, 0, 1, 1], [], []>} : vector<8x32xf32>, vector<32x128xf32>, vector<8x128xf32> -> vector<8x128xf32>
    %264 = arith.index_cast %262 : i32 to index
    %c0_109 = arith.constant 0 : index
    %265 = vector.load %arg11[%264, %c0_109] : memref<64x128xf32, #tpu.memory_space<vmem>>, vector<8x128xf32>
    %266 = arith.addf %263, %265 : vector<8x128xf32>
    %267 = math.tanh %266 : vector<8x128xf32>
    %268 = vector.extract_strided_slice %267 {offsets = [0, 0], sizes = [8, 32], strides = [1, 1]} : vector<8x128xf32> to vector<8x32xf32>
    %cst_110 = arith.constant 5.000000e-01 : f32
    %269 = vector.broadcast %cst_110 : f32 to vector<8x32xf32>
    %270 = arith.mulf %269, %268 : vector<8x32xf32>
    %cst_111 = arith.constant 5.000000e-01 : f32
    %271 = vector.broadcast %cst_111 : f32 to vector<8x32xf32>
    %272 = arith.addf %271, %270 : vector<8x32xf32>
    %273 = vector.extract_strided_slice %267 {offsets = [0, 32], sizes = [8, 32], strides = [1, 1]} : vector<8x128xf32> to vector<8x32xf32>
    %cst_112 = arith.constant 5.000000e-01 : f32
    %274 = vector.broadcast %cst_112 : f32 to vector<8x32xf32>
    %275 = arith.mulf %274, %273 : vector<8x32xf32>
    %cst_113 = arith.constant 5.000000e-01 : f32
    %276 = vector.broadcast %cst_113 : f32 to vector<8x32xf32>
    %277 = arith.addf %276, %275 : vector<8x32xf32>
    %278 = vector.extract_strided_slice %267 {offsets = [0, 64], sizes = [8, 32], strides = [1, 1]} : vector<8x128xf32> to vector<8x32xf32>
    %279 = vector.extract_strided_slice %267 {offsets = [0, 96], sizes = [8, 32], strides = [1, 1]} : vector<8x128xf32> to vector<8x32xf32>
    %cst_114 = arith.constant 5.000000e-01 : f32
    %280 = vector.broadcast %cst_114 : f32 to vector<8x32xf32>
    %281 = arith.mulf %280, %279 : vector<8x32xf32>
    %cst_115 = arith.constant 5.000000e-01 : f32
    %282 = vector.broadcast %cst_115 : f32 to vector<8x32xf32>
    %283 = arith.addf %282, %281 : vector<8x32xf32>
    %284 = arith.mulf %277, %260 : vector<8x32xf32>
    %285 = arith.mulf %272, %278 : vector<8x32xf32>
    %286 = arith.addf %284, %285 : vector<8x32xf32>
    %287 = math.tanh %286 : vector<8x32xf32>
    %288 = arith.mulf %283, %287 : vector<8x32xf32>
    %c1_i32_116 = arith.constant 1 : i32
    %c8_i32_117 = arith.constant 8 : i32
    %289 = arith.muli %c1_i32_116, %c8_i32_117 : i32
    %290 = tpu.assume_multiple %289, 8 : i32
    %cst_118 = arith.constant dense<0.000000e+00> : vector<8x128xf32>
    %291 = tpu.matmul %288, %258, %cst_118 {dimension_numbers = #tpu.dot_dimension_numbers<[1], [0], [0], [1], [0, 0, 1, 1], [], []>} : vector<8x32xf32>, vector<32x128xf32>, vector<8x128xf32> -> vector<8x128xf32>
    %292 = arith.index_cast %290 : i32 to index
    %c0_119 = arith.constant 0 : index
    %293 = vector.load %arg11[%292, %c0_119] : memref<64x128xf32, #tpu.memory_space<vmem>>, vector<8x128xf32>
    %294 = arith.addf %291, %293 : vector<8x128xf32>
    %295 = math.tanh %294 : vector<8x128xf32>
    %296 = vector.extract_strided_slice %295 {offsets = [0, 0], sizes = [8, 32], strides = [1, 1]} : vector<8x128xf32> to vector<8x32xf32>
    %cst_120 = arith.constant 5.000000e-01 : f32
    %297 = vector.broadcast %cst_120 : f32 to vector<8x32xf32>
    %298 = arith.mulf %297, %296 : vector<8x32xf32>
    %cst_121 = arith.constant 5.000000e-01 : f32
    %299 = vector.broadcast %cst_121 : f32 to vector<8x32xf32>
    %300 = arith.addf %299, %298 : vector<8x32xf32>
    %301 = vector.extract_strided_slice %295 {offsets = [0, 32], sizes = [8, 32], strides = [1, 1]} : vector<8x128xf32> to vector<8x32xf32>
    %cst_122 = arith.constant 5.000000e-01 : f32
    %302 = vector.broadcast %cst_122 : f32 to vector<8x32xf32>
    %303 = arith.mulf %302, %301 : vector<8x32xf32>
    %cst_123 = arith.constant 5.000000e-01 : f32
    %304 = vector.broadcast %cst_123 : f32 to vector<8x32xf32>
    %305 = arith.addf %304, %303 : vector<8x32xf32>
    %306 = vector.extract_strided_slice %295 {offsets = [0, 64], sizes = [8, 32], strides = [1, 1]} : vector<8x128xf32> to vector<8x32xf32>
    %307 = vector.extract_strided_slice %295 {offsets = [0, 96], sizes = [8, 32], strides = [1, 1]} : vector<8x128xf32> to vector<8x32xf32>
    %cst_124 = arith.constant 5.000000e-01 : f32
    %308 = vector.broadcast %cst_124 : f32 to vector<8x32xf32>
    %309 = arith.mulf %308, %307 : vector<8x32xf32>
    %cst_125 = arith.constant 5.000000e-01 : f32
    %310 = vector.broadcast %cst_125 : f32 to vector<8x32xf32>
    %311 = arith.addf %310, %309 : vector<8x32xf32>
    %312 = arith.mulf %305, %286 : vector<8x32xf32>
    %313 = arith.mulf %300, %306 : vector<8x32xf32>
    %314 = arith.addf %312, %313 : vector<8x32xf32>
    %315 = math.tanh %314 : vector<8x32xf32>
    %316 = arith.mulf %311, %315 : vector<8x32xf32>
    %c2_i32_126 = arith.constant 2 : i32
    %c8_i32_127 = arith.constant 8 : i32
    %317 = arith.muli %c2_i32_126, %c8_i32_127 : i32
    %318 = tpu.assume_multiple %317, 8 : i32
    %cst_128 = arith.constant dense<0.000000e+00> : vector<8x128xf32>
    %319 = tpu.matmul %316, %258, %cst_128 {dimension_numbers = #tpu.dot_dimension_numbers<[1], [0], [0], [1], [0, 0, 1, 1], [], []>} : vector<8x32xf32>, vector<32x128xf32>, vector<8x128xf32> -> vector<8x128xf32>
    %320 = arith.index_cast %318 : i32 to index
    %c0_129 = arith.constant 0 : index
    %321 = vector.load %arg11[%320, %c0_129] : memref<64x128xf32, #tpu.memory_space<vmem>>, vector<8x128xf32>
    %322 = arith.addf %319, %321 : vector<8x128xf32>
    %323 = math.tanh %322 : vector<8x128xf32>
    %324 = vector.extract_strided_slice %323 {offsets = [0, 0], sizes = [8, 32], strides = [1, 1]} : vector<8x128xf32> to vector<8x32xf32>
    %cst_130 = arith.constant 5.000000e-01 : f32
    %325 = vector.broadcast %cst_130 : f32 to vector<8x32xf32>
    %326 = arith.mulf %325, %324 : vector<8x32xf32>
    %cst_131 = arith.constant 5.000000e-01 : f32
    %327 = vector.broadcast %cst_131 : f32 to vector<8x32xf32>
    %328 = arith.addf %327, %326 : vector<8x32xf32>
    %329 = vector.extract_strided_slice %323 {offsets = [0, 32], sizes = [8, 32], strides = [1, 1]} : vector<8x128xf32> to vector<8x32xf32>
    %cst_132 = arith.constant 5.000000e-01 : f32
    %330 = vector.broadcast %cst_132 : f32 to vector<8x32xf32>
    %331 = arith.mulf %330, %329 : vector<8x32xf32>
    %cst_133 = arith.constant 5.000000e-01 : f32
    %332 = vector.broadcast %cst_133 : f32 to vector<8x32xf32>
    %333 = arith.addf %332, %331 : vector<8x32xf32>
    %334 = vector.extract_strided_slice %323 {offsets = [0, 64], sizes = [8, 32], strides = [1, 1]} : vector<8x128xf32> to vector<8x32xf32>
    %335 = vector.extract_strided_slice %323 {offsets = [0, 96], sizes = [8, 32], strides = [1, 1]} : vector<8x128xf32> to vector<8x32xf32>
    %cst_134 = arith.constant 5.000000e-01 : f32
    %336 = vector.broadcast %cst_134 : f32 to vector<8x32xf32>
    %337 = arith.mulf %336, %335 : vector<8x32xf32>
    %cst_135 = arith.constant 5.000000e-01 : f32
    %338 = vector.broadcast %cst_135 : f32 to vector<8x32xf32>
    %339 = arith.addf %338, %337 : vector<8x32xf32>
    %340 = arith.mulf %333, %314 : vector<8x32xf32>
    %341 = arith.mulf %328, %334 : vector<8x32xf32>
    %342 = arith.addf %340, %341 : vector<8x32xf32>
    %343 = math.tanh %342 : vector<8x32xf32>
    %344 = arith.mulf %339, %343 : vector<8x32xf32>
    %c3_i32_136 = arith.constant 3 : i32
    %c8_i32_137 = arith.constant 8 : i32
    %345 = arith.muli %c3_i32_136, %c8_i32_137 : i32
    %346 = tpu.assume_multiple %345, 8 : i32
    %cst_138 = arith.constant dense<0.000000e+00> : vector<8x128xf32>
    %347 = tpu.matmul %344, %258, %cst_138 {dimension_numbers = #tpu.dot_dimension_numbers<[1], [0], [0], [1], [0, 0, 1, 1], [], []>} : vector<8x32xf32>, vector<32x128xf32>, vector<8x128xf32> -> vector<8x128xf32>
    %348 = arith.index_cast %346 : i32 to index
    %c0_139 = arith.constant 0 : index
    %349 = vector.load %arg11[%348, %c0_139] : memref<64x128xf32, #tpu.memory_space<vmem>>, vector<8x128xf32>
    %350 = arith.addf %347, %349 : vector<8x128xf32>
    %351 = math.tanh %350 : vector<8x128xf32>
    %352 = vector.extract_strided_slice %351 {offsets = [0, 0], sizes = [8, 32], strides = [1, 1]} : vector<8x128xf32> to vector<8x32xf32>
    %cst_140 = arith.constant 5.000000e-01 : f32
    %353 = vector.broadcast %cst_140 : f32 to vector<8x32xf32>
    %354 = arith.mulf %353, %352 : vector<8x32xf32>
    %cst_141 = arith.constant 5.000000e-01 : f32
    %355 = vector.broadcast %cst_141 : f32 to vector<8x32xf32>
    %356 = arith.addf %355, %354 : vector<8x32xf32>
    %357 = vector.extract_strided_slice %351 {offsets = [0, 32], sizes = [8, 32], strides = [1, 1]} : vector<8x128xf32> to vector<8x32xf32>
    %cst_142 = arith.constant 5.000000e-01 : f32
    %358 = vector.broadcast %cst_142 : f32 to vector<8x32xf32>
    %359 = arith.mulf %358, %357 : vector<8x32xf32>
    %cst_143 = arith.constant 5.000000e-01 : f32
    %360 = vector.broadcast %cst_143 : f32 to vector<8x32xf32>
    %361 = arith.addf %360, %359 : vector<8x32xf32>
    %362 = vector.extract_strided_slice %351 {offsets = [0, 64], sizes = [8, 32], strides = [1, 1]} : vector<8x128xf32> to vector<8x32xf32>
    %363 = vector.extract_strided_slice %351 {offsets = [0, 96], sizes = [8, 32], strides = [1, 1]} : vector<8x128xf32> to vector<8x32xf32>
    %cst_144 = arith.constant 5.000000e-01 : f32
    %364 = vector.broadcast %cst_144 : f32 to vector<8x32xf32>
    %365 = arith.mulf %364, %363 : vector<8x32xf32>
    %cst_145 = arith.constant 5.000000e-01 : f32
    %366 = vector.broadcast %cst_145 : f32 to vector<8x32xf32>
    %367 = arith.addf %366, %365 : vector<8x32xf32>
    %368 = arith.mulf %361, %342 : vector<8x32xf32>
    %369 = arith.mulf %356, %362 : vector<8x32xf32>
    %370 = arith.addf %368, %369 : vector<8x32xf32>
    %371 = math.tanh %370 : vector<8x32xf32>
    %372 = arith.mulf %367, %371 : vector<8x32xf32>
    %c4_i32_146 = arith.constant 4 : i32
    %c8_i32_147 = arith.constant 8 : i32
    %373 = arith.muli %c4_i32_146, %c8_i32_147 : i32
    %374 = tpu.assume_multiple %373, 8 : i32
    %cst_148 = arith.constant dense<0.000000e+00> : vector<8x128xf32>
    %375 = tpu.matmul %372, %258, %cst_148 {dimension_numbers = #tpu.dot_dimension_numbers<[1], [0], [0], [1], [0, 0, 1, 1], [], []>} : vector<8x32xf32>, vector<32x128xf32>, vector<8x128xf32> -> vector<8x128xf32>
    %376 = arith.index_cast %374 : i32 to index
    %c0_149 = arith.constant 0 : index
    %377 = vector.load %arg11[%376, %c0_149] : memref<64x128xf32, #tpu.memory_space<vmem>>, vector<8x128xf32>
    %378 = arith.addf %375, %377 : vector<8x128xf32>
    %379 = math.tanh %378 : vector<8x128xf32>
    %380 = vector.extract_strided_slice %379 {offsets = [0, 0], sizes = [8, 32], strides = [1, 1]} : vector<8x128xf32> to vector<8x32xf32>
    %cst_150 = arith.constant 5.000000e-01 : f32
    %381 = vector.broadcast %cst_150 : f32 to vector<8x32xf32>
    %382 = arith.mulf %381, %380 : vector<8x32xf32>
    %cst_151 = arith.constant 5.000000e-01 : f32
    %383 = vector.broadcast %cst_151 : f32 to vector<8x32xf32>
    %384 = arith.addf %383, %382 : vector<8x32xf32>
    %385 = vector.extract_strided_slice %379 {offsets = [0, 32], sizes = [8, 32], strides = [1, 1]} : vector<8x128xf32> to vector<8x32xf32>
    %cst_152 = arith.constant 5.000000e-01 : f32
    %386 = vector.broadcast %cst_152 : f32 to vector<8x32xf32>
    %387 = arith.mulf %386, %385 : vector<8x32xf32>
    %cst_153 = arith.constant 5.000000e-01 : f32
    %388 = vector.broadcast %cst_153 : f32 to vector<8x32xf32>
    %389 = arith.addf %388, %387 : vector<8x32xf32>
    %390 = vector.extract_strided_slice %379 {offsets = [0, 64], sizes = [8, 32], strides = [1, 1]} : vector<8x128xf32> to vector<8x32xf32>
    %391 = vector.extract_strided_slice %379 {offsets = [0, 96], sizes = [8, 32], strides = [1, 1]} : vector<8x128xf32> to vector<8x32xf32>
    %cst_154 = arith.constant 5.000000e-01 : f32
    %392 = vector.broadcast %cst_154 : f32 to vector<8x32xf32>
    %393 = arith.mulf %392, %391 : vector<8x32xf32>
    %cst_155 = arith.constant 5.000000e-01 : f32
    %394 = vector.broadcast %cst_155 : f32 to vector<8x32xf32>
    %395 = arith.addf %394, %393 : vector<8x32xf32>
    %396 = arith.mulf %389, %370 : vector<8x32xf32>
    %397 = arith.mulf %384, %390 : vector<8x32xf32>
    %398 = arith.addf %396, %397 : vector<8x32xf32>
    %399 = math.tanh %398 : vector<8x32xf32>
    %400 = arith.mulf %395, %399 : vector<8x32xf32>
    %c5_i32_156 = arith.constant 5 : i32
    %c8_i32_157 = arith.constant 8 : i32
    %401 = arith.muli %c5_i32_156, %c8_i32_157 : i32
    %402 = tpu.assume_multiple %401, 8 : i32
    %cst_158 = arith.constant dense<0.000000e+00> : vector<8x128xf32>
    %403 = tpu.matmul %400, %258, %cst_158 {dimension_numbers = #tpu.dot_dimension_numbers<[1], [0], [0], [1], [0, 0, 1, 1], [], []>} : vector<8x32xf32>, vector<32x128xf32>, vector<8x128xf32> -> vector<8x128xf32>
    %404 = arith.index_cast %402 : i32 to index
    %c0_159 = arith.constant 0 : index
    %405 = vector.load %arg11[%404, %c0_159] : memref<64x128xf32, #tpu.memory_space<vmem>>, vector<8x128xf32>
    %406 = arith.addf %403, %405 : vector<8x128xf32>
    %407 = math.tanh %406 : vector<8x128xf32>
    %408 = vector.extract_strided_slice %407 {offsets = [0, 0], sizes = [8, 32], strides = [1, 1]} : vector<8x128xf32> to vector<8x32xf32>
    %cst_160 = arith.constant 5.000000e-01 : f32
    %409 = vector.broadcast %cst_160 : f32 to vector<8x32xf32>
    %410 = arith.mulf %409, %408 : vector<8x32xf32>
    %cst_161 = arith.constant 5.000000e-01 : f32
    %411 = vector.broadcast %cst_161 : f32 to vector<8x32xf32>
    %412 = arith.addf %411, %410 : vector<8x32xf32>
    %413 = vector.extract_strided_slice %407 {offsets = [0, 32], sizes = [8, 32], strides = [1, 1]} : vector<8x128xf32> to vector<8x32xf32>
    %cst_162 = arith.constant 5.000000e-01 : f32
    %414 = vector.broadcast %cst_162 : f32 to vector<8x32xf32>
    %415 = arith.mulf %414, %413 : vector<8x32xf32>
    %cst_163 = arith.constant 5.000000e-01 : f32
    %416 = vector.broadcast %cst_163 : f32 to vector<8x32xf32>
    %417 = arith.addf %416, %415 : vector<8x32xf32>
    %418 = vector.extract_strided_slice %407 {offsets = [0, 64], sizes = [8, 32], strides = [1, 1]} : vector<8x128xf32> to vector<8x32xf32>
    %419 = vector.extract_strided_slice %407 {offsets = [0, 96], sizes = [8, 32], strides = [1, 1]} : vector<8x128xf32> to vector<8x32xf32>
    %cst_164 = arith.constant 5.000000e-01 : f32
    %420 = vector.broadcast %cst_164 : f32 to vector<8x32xf32>
    %421 = arith.mulf %420, %419 : vector<8x32xf32>
    %cst_165 = arith.constant 5.000000e-01 : f32
    %422 = vector.broadcast %cst_165 : f32 to vector<8x32xf32>
    %423 = arith.addf %422, %421 : vector<8x32xf32>
    %424 = arith.mulf %417, %398 : vector<8x32xf32>
    %425 = arith.mulf %412, %418 : vector<8x32xf32>
    %426 = arith.addf %424, %425 : vector<8x32xf32>
    %427 = math.tanh %426 : vector<8x32xf32>
    %428 = arith.mulf %423, %427 : vector<8x32xf32>
    %c6_i32_166 = arith.constant 6 : i32
    %c8_i32_167 = arith.constant 8 : i32
    %429 = arith.muli %c6_i32_166, %c8_i32_167 : i32
    %430 = tpu.assume_multiple %429, 8 : i32
    %cst_168 = arith.constant dense<0.000000e+00> : vector<8x128xf32>
    %431 = tpu.matmul %428, %258, %cst_168 {dimension_numbers = #tpu.dot_dimension_numbers<[1], [0], [0], [1], [0, 0, 1, 1], [], []>} : vector<8x32xf32>, vector<32x128xf32>, vector<8x128xf32> -> vector<8x128xf32>
    %432 = arith.index_cast %430 : i32 to index
    %c0_169 = arith.constant 0 : index
    %433 = vector.load %arg11[%432, %c0_169] : memref<64x128xf32, #tpu.memory_space<vmem>>, vector<8x128xf32>
    %434 = arith.addf %431, %433 : vector<8x128xf32>
    %435 = math.tanh %434 : vector<8x128xf32>
    %436 = vector.extract_strided_slice %435 {offsets = [0, 0], sizes = [8, 32], strides = [1, 1]} : vector<8x128xf32> to vector<8x32xf32>
    %cst_170 = arith.constant 5.000000e-01 : f32
    %437 = vector.broadcast %cst_170 : f32 to vector<8x32xf32>
    %438 = arith.mulf %437, %436 : vector<8x32xf32>
    %cst_171 = arith.constant 5.000000e-01 : f32
    %439 = vector.broadcast %cst_171 : f32 to vector<8x32xf32>
    %440 = arith.addf %439, %438 : vector<8x32xf32>
    %441 = vector.extract_strided_slice %435 {offsets = [0, 32], sizes = [8, 32], strides = [1, 1]} : vector<8x128xf32> to vector<8x32xf32>
    %cst_172 = arith.constant 5.000000e-01 : f32
    %442 = vector.broadcast %cst_172 : f32 to vector<8x32xf32>
    %443 = arith.mulf %442, %441 : vector<8x32xf32>
    %cst_173 = arith.constant 5.000000e-01 : f32
    %444 = vector.broadcast %cst_173 : f32 to vector<8x32xf32>
    %445 = arith.addf %444, %443 : vector<8x32xf32>
    %446 = vector.extract_strided_slice %435 {offsets = [0, 64], sizes = [8, 32], strides = [1, 1]} : vector<8x128xf32> to vector<8x32xf32>
    %447 = vector.extract_strided_slice %435 {offsets = [0, 96], sizes = [8, 32], strides = [1, 1]} : vector<8x128xf32> to vector<8x32xf32>
    %cst_174 = arith.constant 5.000000e-01 : f32
    %448 = vector.broadcast %cst_174 : f32 to vector<8x32xf32>
    %449 = arith.mulf %448, %447 : vector<8x32xf32>
    %cst_175 = arith.constant 5.000000e-01 : f32
    %450 = vector.broadcast %cst_175 : f32 to vector<8x32xf32>
    %451 = arith.addf %450, %449 : vector<8x32xf32>
    %452 = arith.mulf %445, %426 : vector<8x32xf32>
    %453 = arith.mulf %440, %446 : vector<8x32xf32>
    %454 = arith.addf %452, %453 : vector<8x32xf32>
    %455 = math.tanh %454 : vector<8x32xf32>
    %456 = arith.mulf %451, %455 : vector<8x32xf32>
    %c7_i32_176 = arith.constant 7 : i32
    %c8_i32_177 = arith.constant 8 : i32
    %457 = arith.muli %c7_i32_176, %c8_i32_177 : i32
    %458 = tpu.assume_multiple %457, 8 : i32
    %cst_178 = arith.constant dense<0.000000e+00> : vector<8x128xf32>
    %459 = tpu.matmul %456, %258, %cst_178 {dimension_numbers = #tpu.dot_dimension_numbers<[1], [0], [0], [1], [0, 0, 1, 1], [], []>} : vector<8x32xf32>, vector<32x128xf32>, vector<8x128xf32> -> vector<8x128xf32>
    %460 = arith.index_cast %458 : i32 to index
    %c0_179 = arith.constant 0 : index
    %461 = vector.load %arg11[%460, %c0_179] : memref<64x128xf32, #tpu.memory_space<vmem>>, vector<8x128xf32>
    %462 = arith.addf %459, %461 : vector<8x128xf32>
    %463 = math.tanh %462 : vector<8x128xf32>
    %464 = vector.extract_strided_slice %463 {offsets = [0, 0], sizes = [8, 32], strides = [1, 1]} : vector<8x128xf32> to vector<8x32xf32>
    %cst_180 = arith.constant 5.000000e-01 : f32
    %465 = vector.broadcast %cst_180 : f32 to vector<8x32xf32>
    %466 = arith.mulf %465, %464 : vector<8x32xf32>
    %cst_181 = arith.constant 5.000000e-01 : f32
    %467 = vector.broadcast %cst_181 : f32 to vector<8x32xf32>
    %468 = arith.addf %467, %466 : vector<8x32xf32>
    %469 = vector.extract_strided_slice %463 {offsets = [0, 32], sizes = [8, 32], strides = [1, 1]} : vector<8x128xf32> to vector<8x32xf32>
    %cst_182 = arith.constant 5.000000e-01 : f32
    %470 = vector.broadcast %cst_182 : f32 to vector<8x32xf32>
    %471 = arith.mulf %470, %469 : vector<8x32xf32>
    %cst_183 = arith.constant 5.000000e-01 : f32
    %472 = vector.broadcast %cst_183 : f32 to vector<8x32xf32>
    %473 = arith.addf %472, %471 : vector<8x32xf32>
    %474 = vector.extract_strided_slice %463 {offsets = [0, 64], sizes = [8, 32], strides = [1, 1]} : vector<8x128xf32> to vector<8x32xf32>
    %475 = vector.extract_strided_slice %463 {offsets = [0, 96], sizes = [8, 32], strides = [1, 1]} : vector<8x128xf32> to vector<8x32xf32>
    %cst_184 = arith.constant 5.000000e-01 : f32
    %476 = vector.broadcast %cst_184 : f32 to vector<8x32xf32>
    %477 = arith.mulf %476, %475 : vector<8x32xf32>
    %cst_185 = arith.constant 5.000000e-01 : f32
    %478 = vector.broadcast %cst_185 : f32 to vector<8x32xf32>
    %479 = arith.addf %478, %477 : vector<8x32xf32>
    %480 = arith.mulf %473, %454 : vector<8x32xf32>
    %481 = arith.mulf %468, %474 : vector<8x32xf32>
    %482 = arith.addf %480, %481 : vector<8x32xf32>
    %483 = math.tanh %482 : vector<8x32xf32>
    %484 = arith.mulf %479, %483 : vector<8x32xf32>
    %c8_i32_186 = arith.constant 8 : i32
    %c8 = arith.constant 8 : index
    %c0_187 = arith.constant 0 : index
    %485 = vector.load %arg12[%c8, %c0_187] : memref<16x32xf32, #tpu.memory_space<vmem>>, vector<8x32xf32>
    tpu.vector_store %arg12[%c8, %c0_187], %484 {strides = array<i32>} : memref<16x32xf32, #tpu.memory_space<vmem>>, vector<8x32xf32>,
    %c0_188 = arith.constant 0 : index
    %c0_189 = arith.constant 0 : index
    %486 = vector.load %arg12[%c0_188, %c0_189] : memref<16x32xf32, #tpu.memory_space<vmem>>, vector<16x32xf32>
    %c0_190 = arith.constant 0 : index
    %c0_191 = arith.constant 0 : index
    %487 = vector.load %arg7[%c0_190, %c0_191] : memref<32x3xf32, #tpu.memory_space<vmem>>, vector<32x3xf32>
    %cst_192 = arith.constant dense<0.000000e+00> : vector<16x3xf32>
    %488 = tpu.matmul %486, %487, %cst_192 {dimension_numbers = #tpu.dot_dimension_numbers<[1], [0], [0], [1], [0, 0, 1, 1], [], []>} : vector<16x32xf32>, vector<32x3xf32>, vector<16x3xf32> -> vector<16x3xf32>
    %c0_193 = arith.constant 0 : index
    %c0_194 = arith.constant 0 : index
    %489 = vector.load %arg8[%c0_193, %c0_194] : memref<1x3xf32, #tpu.memory_space<vmem>>, vector<1x3xf32>
    %490 = vector.broadcast %489 : vector<1x3xf32> to vector<16x3xf32>
    %491 = arith.addf %488, %490 : vector<16x3xf32>
    %c0_195 = arith.constant 0 : index
    %c0_196 = arith.constant 0 : index
    %492 = vector.load %arg9[%c0_195, %c0_196] : memref<16x3xf32, #tpu.memory_space<vmem>>, vector<16x3xf32>
    tpu.vector_store %arg9[%c0_195, %c0_196], %491 {strides = array<i32>} : memref<16x3xf32, #tpu.memory_space<vmem>>, vector<16x3xf32>,
    return
  }
}

</mosaic_0001>

<bundles_post_ra>
// kernel: lstm_forward.1
= control target key start
LH: loop header
LB: loop body
LE: loop exit
PB: predicated region body
PF: predicated region fallthrough
CT: control target
= control target key end

     0   :  { %14 = vsyncpa [#allocation6], 0  ;;  %s2496_s30 = smov [#allocation5]   ;;  %s2966_s0 = inlined_call_operand.vmem [shape: f32[64,4], index: 0, kind: input, shape index: {}]   ;;  %s2967_s1 = inlined_call_operand.vmem [shape: f32[4,128], index: 1, kind: input, shape index: {}]   ;;  %s2968_s2 = inlined_call_operand.vmem [shape: f32[32,128], index: 2, kind: input, shape index: {}]   ;;  %s2969_s3 = inlined_call_operand.vmem [shape: f32[1,128], index: 3, kind: input, shape index: {}]   ;;  %s2970_s4 = inlined_call_operand.vmem [shape: f32[32,128], index: 4, kind: input, shape index: {}]   ;;  %s2971_s5 = inlined_call_operand.vmem [shape: f32[32,128], index: 5, kind: input, shape index: {}]   ;;  %s2972_s6 = inlined_call_operand.vmem [shape: f32[1,128], index: 6, kind: input, shape index: {}]   ;;  %s2973_s7 = inlined_call_operand.hbm [shape: f32[32,3], index: 7, kind: input, shape index: {}]   ;;  %s2974_s8 = inlined_call_operand.vmem [shape: f32[1,3], index: 8, kind: input, shape index: {}]   ;;  %s2975_s9 = inlined_call_operand.vmem [shape: f32[16,3], index: 9, kind: output, shape index: {}]  }
   0x1   :  { %s34_s10 = sshll.u32 %s2496_s30, 4  ;;  %s35_s10 = int_to_ptr.vmem [resolvable:$true] %s34_s10 }
   0x2   :  { %s2482_s11 = scalar_lea.vmem %s35_s10, 512  ;;  %p2487_p1 = scmp.lt.s32.totalorder %s35_s10, %s35_s10 }
   0x3   :  { %p2483_p0 = scmp.ne.s32.totalorder %s35_s10, %s2482_s11  ;;  %p2488_p2 = scmp.lt.s32.totalorder %s2482_s11, %s2482_s11 }
   0x5   :  { %p2489_p3 = por %p2488_p2, %p2487_p1 }
   0x7   :  { %p2490_p4 = pnand %p2489_p3, %p2483_p0 }
   0x9   :  { %2493 = shalt.err (!%p2490_p4)
}
   0xa   :  { %s2497_s12 = smov 128   ;;  %s2498_s13 = smov 8  }
   0xb   :  { %40 = dma.hbm_to_vmem [thread:$0]  %s2973_s7, 512, %s35_s10, [#allocation6], %s2497_s12, %s2497_s12, %s2498_s13  }
   0xc   :  { %2494 = dma.done.wait [#allocation6], 512  }
   0xd   :  { %2495 = vsyncadd [#allocation6], 4294966784  ;;  %v2499_v0 = vmov 0.0   ;;  %vm2500_vm0 = vmmov 0   ;;  %vm87_vm1 = vcmask 1043456   ;;  %vm62_vm2 = vcmask 31744  }
   0xe   :  { %2196 = vmatprep.subr.mxu1 %v2499_v0  ;;  %2204 = vmatprep.mubr.msk.f32.mxu1 %vm2500_vm0, %v2499_v0  ;;  %v54_v1 = vld [vmem:[%s2967_s1] sm:$0xf]  ;;  %v2565_v2 = vld [vmem:[%s2968_s2 + $0x18] sm:$0xff]  ;;  %v47_v4 = vld [vmem:[%s2966_s0 + $0x8] sm:$0xff]  ;;  %s2501_s29 = smov 64   ;;  %s2502_s30 = smov 32  }
   0xf   :  { %v46_v3 = vld [vmem:[%s2966_s0] sm:$0xff]  ;;  %2182 = vmatprep.subr.msk.mxu0 %vm87_vm1, %v54_v1  ;;  %2197 = vmatpush3.msra.mxu1 %v2565_v2  ;;  %v2577_v5 = vld [vmem:[%s2968_s2 + $0x10] sm:$0xff]  ;;  %v2585_v6 = vld [vmem:[%s2968_s2 + $0x8] sm:$0xff]  ;;  %vm209_vm3 = vcmask 261120   ;;  %vm2031_vm4 = vcmask 23552  }
  0x10   :  { %2183 = vmatpush3.msk.msra.mxu0 %vm87_vm1, %v54_v1  ;;  %2184 = vmatprep.mubr.msk.f32.mxu0 %vm62_vm2, %v46_v3  ;;  %v2593_v7 = vld [vmem:[%s2968_s2] sm:$0xff]  ;;  %v48_v39 = vld [vmem:[%s2966_s0 + $0x10] sm:$0xff]  ;;  %v49_v40 = vld [vmem:[%s2966_s0 + $0x18] sm:$0xff] }
  0x11   :  { %2198 = vmatprep.subr.mxu1 %v2499_v0  ;;  %2185 = vmatmul.mubr.msk.f32.vlgmr.msra.gmra.mxu0 %vm62_vm2, %v47_v4  ;;  %v2621_v9 = vld [vmem:[%s2969_s3] ss:$0 sm:$0xff]  ;;  %v51_v42 = vld [vmem:[%s2966_s0 + $0x28] sm:$0xff]  ;;  %v52_v43 = vld [vmem:[%s2966_s0 + $0x30] sm:$0xff] }
  0x12   :  { %2199 = vmatpush3.msra.mxu1 %v2577_v5  ;;  %2218 = vmatprep.subr.mxu0 %v2499_v0  ;;  %v50_v41 = vld [vmem:[%s2966_s0 + $0x20] sm:$0xff]  ;;  %v53_v44 = vld [vmem:[%s2966_s0 + $0x38] sm:$0xff] }
  0x13   :  { %2200 = vmatprep.subr.mxu1 %v2499_v0  ;;  %2219 = vmatpush3.msra.mxu0 %v2565_v2 }
  0x14   :  { %2201 = vmatpush3.msra.mxu1 %v2585_v6  ;;  %2220 = vmatprep.subr.mxu0 %v2499_v0 }
  0x15   :  { %2202 = vmatprep.subr.mxu1 %v2499_v0  ;;  %2221 = vmatpush3.msra.mxu0 %v2577_v5 }
  0x16   :  { %2203 = vmatpush3.msra.mxu1 %v2593_v7  ;;  %2222 = vmatprep.subr.mxu0 %v2499_v0 }
  0x17   :  { %2205 = vmatmul.mubr.f32.vlgmr.msra.gmra.mxu1 %v2499_v0  ;;  %2207 = vmatprep.subr.mxu1 %v2499_v0 }
  0x18   :  { %2208 = vmatpush3.msra.mxu1 %v2565_v2  ;;  %2215 = vmatprep.mubr.msk.f32.mxu1 %vm2500_vm0, %v2499_v0 }
  0x19   :  { %2209 = vmatprep.subr.mxu1 %v2499_v0  ;;  %2223 = vmatpush3.msra.mxu0 %v2585_v6 }
  0x1a   :  { %2210 = vmatpush3.msra.mxu1 %v2577_v5  ;;  %2224 = vmatprep.subr.mxu0 %v2499_v0 }
  0x1b   :  { %2211 = vmatprep.subr.mxu1 %v2499_v0  ;;  %2225 = vmatpush3.msra.mxu0 %v2593_v7 }
  0x1c   :  { %2212 = vmatpush3.msra.mxu1 %v2585_v6  ;;  %2240 = vmatprep.subr.mxu0 %v2499_v0 }
  0x1d   :  { %2213 = vmatprep.subr.mxu1 %v2499_v0  ;;  %2187 = vmatprep.mubr.msk.f32.mxu0 %vm62_vm2, %v48_v39 }
  0x1e   :  { %2214 = vmatpush3.msra.mxu1 %v2593_v7  ;;  %2188 = vmatmul.mubr.msk.f32.gmra.mxu0 %vm62_vm2, %v49_v40 }
  0x1f   :  { %2229 = vmatprep.subr.mxu1 %v2499_v0  ;;  %2190 = vmatprep.mubr.msk.f32.mxu0 %vm62_vm2, %v50_v41 }
  0x22   :  { %2191 = vmatmul.mubr.msk.f32.gmra.mxu0 %vm62_vm2, %v51_v42 }
  0x23   :  { %2193 = vmatprep.mubr.msk.f32.mxu0 %vm62_vm2, %v52_v43 }
  0x26   :  { %2194 = vmatmul.mubr.msk.f32.gmra.mxu0 %vm62_vm2, %v53_v44 }
  0x27   :  { %2226 = vmatprep.mubr.msk.f32.mxu0 %vm2500_vm0, %v2499_v0 }
  0xd1   :  { %v2186_v8 = vpop.f32.mrf.mxu0 }
  0xd2   :  { %v163_v27 = vadd.f32 %v2186_v8, %v2621_v9 }
  0xd3   :  { %v157_v10 = vpop.f32.mrf.mxu0 }
  0xd4   :  { %v158_v11 = vadd.f32 %v2621_v9, %v157_v10 }
  0xd7   :  { %v279_v12 = vpop.f32.mrf.mxu1 }
  0xd8   :  { %v280_v13 = vadd.f32 %v279_v12, %v158_v11 }
  0xd9   :  { %v2206_v14 = vpop.f32.mrf.mxu1 }
  0xda   :  { %2410 = vtanh.f32 %v280_v13 }
  0xde   :  { %v2189_v49 = vpop.f32.mrf.mxu0 }
  0xdf   :  { %v173_v13 = vadd.f32 %v2189_v49, %v2621_v9 }
  0xe0   :  { %v167_v50 = vpop.f32.mrf.mxu0 }
  0xe1   :  { %v168_v55 = vadd.f32 %v2621_v9, %v167_v50 }
  0xe2   :  { %v2683_v51 = vpop.f32.mrf.mxu0 }
  0xe4   :  { %v2685_v52 = vpop.f32.mrf.mxu0 }
  0xe6   :  { %v2687_v53 = vpop.f32.mrf.mxu0 }
  0xe7   :  { %v2411_v15 = vpop.eup %2410 }
  0xe8   :  { %288 = vrot.lane.b32.xlu0 %v2411_v15, %s2501_s29  ;;  %v284_v16 = vmul.f32 0.5, %v2411_v15  ;;  %v2689_v54 = vpop.f32.mrf.mxu0 }
  0xea   :  { %v285_v17 = vadd.f32 0.5, %v284_v16 }
  0xec   :  { %v286_v20 = vmul.f32 0.0, %v285_v17 }
 0x15a   :  { %v289_v18 = vpop.permute.xlu0 %288 }
 0x15b   :  { %v291_v19 = vmul.f32 %v289_v18, %v285_v17 }
 0x15d   :  { %293 = vrot.lane.b32.xlu0 %v291_v19, %s2502_s30 }
 0x1cf   :  { %v294_v21 = vpop.permute.xlu0 %293 }
 0x1d0   :  { %v296_v22 = vadd.f32 %v294_v21, %v286_v20 }
 0x1d2   :  { %2412 = vtanh.f32 %v296_v22 }
 0x1df   :  { %v2413_v23 = vpop.eup %2412 }
 0x1e0   :  { %299 = vrot.lane.b32.xlu1 %v2413_v23, %s2501_s29 }
 0x252   :  { %v300_v24 = vpop.permute.xlu1 %299 }
 0x253   :  { %v302_v25 = vmul.f32 %v300_v24, %v285_v17 }
 0x255   :  { %304 = vrot.lane.b32.xlu1 %v302_v25, %s2502_s30 }
 0x2c7   :  { %v305_v26 = vpop.permute.xlu1 %304 }
 0x2c8   :  { %307 = vst.msk [vmem:[#allocation2] sm:$0xff] %vm209_vm3, %v305_v26  ;;  %2216 = vmatmul.mubr.msk.f32.vlgmr.msra.gmra.mxu1 %vm209_vm3, %v305_v26 }
 0x2c9   :  { %2230 = vmatpush3.msra.mxu1 %v2565_v2  ;;  %2237 = vmatprep.mubr.msk.f32.mxu1 %vm2500_vm0, %v2499_v0 }
 0x2ca   :  { %2231 = vmatprep.subr.mxu1 %v2499_v0 }
 0x2cb   :  { %2232 = vmatpush3.msra.mxu1 %v2577_v5 }
 0x2cc   :  { %2233 = vmatprep.subr.mxu1 %v2499_v0 }
 0x2cd   :  { %2234 = vmatpush3.msra.mxu1 %v2585_v6 }
 0x2ce   :  { %2235 = vmatprep.subr.mxu1 %v2499_v0 }
 0x2cf   :  { %2236 = vmatpush3.msra.mxu1 %v2593_v7 }
 0x2d0   :  { %2251 = vmatprep.subr.mxu1 %v2499_v0 }
 0x388   :  { %v378_v28 = vpop.f32.mrf.mxu1 }
 0x389   :  { %v379_v29 = vadd.f32 %v378_v28, %v163_v27 }
 0x38a   :  { %v2217_v30 = vpop.f32.mrf.mxu1 }
 0x38b   :  { %2414 = vtanh.f32 %v379_v29  ;;  %v178_v29 = vadd.f32 %v2621_v9, %v2685_v52 }
 0x398   :  { %v2415_v31 = vpop.eup %2414 }
 0x399   :  { %387 = vrot.lane.b32.xlu0 %v2415_v31, %s2501_s29  ;;  %v383_v32 = vmul.f32 0.5, %v2415_v31 }
 0x39b   :  { %v384_v33 = vadd.f32 0.5, %v383_v32 }
 0x39d   :  { %v385_v36 = vmul.f32 %v384_v33, %v296_v22 }
 0x40b   :  { %v388_v34 = vpop.permute.xlu0 %387 }
 0x40c   :  { %v390_v35 = vmul.f32 %v388_v34, %v384_v33 }
 0x40e   :  { %392 = vrot.lane.b32.xlu1 %v390_v35, %s2502_s30 }
 0x480   :  { %v393_v37 = vpop.permute.xlu1 %392 }
 0x481   :  { %v395_v38 = vadd.f32 %v393_v37, %v385_v36 }
 0x483   :  { %2416 = vtanh.f32 %v395_v38 }
 0x490   :  { %v2417_v45 = vpop.eup %2416 }
 0x491   :  { %398 = vrot.lane.b32.xlu0 %v2417_v45, %s2501_s29 }
 0x503   :  { %v399_v46 = vpop.permute.xlu0 %398 }
 0x504   :  { %v401_v47 = vmul.f32 %v399_v46, %v384_v33 }
 0x506   :  { %403 = vrot.lane.b32.xlu1 %v401_v47, %s2502_s30 }
 0x578   :  { %v404_v48 = vpop.permute.xlu1 %403 }
 0x579   :  { %407 = vst.msk [vmem:[#allocation2 + $0x8] sm:$0xff] %vm209_vm3, %v404_v48  ;;  %2227 = vmatmul.mubr.msk.f32.vlgmr.msra.gmra.mxu0 %vm209_vm3, %v404_v48 }
 0x57a   :  { %2241 = vmatpush3.msra.mxu0 %v2565_v2  ;;  %2248 = vmatprep.mubr.msk.f32.mxu0 %vm2500_vm0, %v2499_v0 }
 0x57b   :  { %2242 = vmatprep.subr.mxu0 %v2499_v0 }
 0x57c   :  { %2243 = vmatpush3.msra.mxu0 %v2577_v5 }
 0x57d   :  { %2244 = vmatprep.subr.mxu0 %v2499_v0 }
 0x57e   :  { %2245 = vmatpush3.msra.mxu0 %v2585_v6 }
 0x57f   :  { %2246 = vmatprep.subr.mxu0 %v2499_v0 }
 0x580   :  { %2247 = vmatpush3.msra.mxu0 %v2593_v7 }
 0x581   :  { %2262 = vmatprep.subr.mxu0 %v2499_v0 }
 0x639   :  { %v478_v56 = vpop.f32.mrf.mxu0 }
 0x63a   :  { %v479_v57 = vadd.f32 %v478_v56, %v168_v55 }
 0x63b   :  { %v2228_v58 = vpop.f32.mrf.mxu0 }
 0x63c   :  { %2418 = vtanh.f32 %v479_v57 }
 0x649   :  { %v2419_v59 = vpop.eup %2418 }
 0x64a   :  { %487 = vrot.lane.b32.xlu0 %v2419_v59, %s2501_s29  ;;  %v483_v60 = vmul.f32 0.5, %v2419_v59 }
 0x64c   :  { %v484_v61 = vadd.f32 0.5, %v483_v60  ;;  %v1019_v60 = vld [vmem:[%s2970_s4 + $0x10] sm:$0xff] }
 0x64e   :  { %v485_v1 = vmul.f32 %v484_v61, %v395_v38 }
 0x6bc   :  { %v488_v62 = vpop.permute.xlu0 %487 }
 0x6bd   :  { %v490_v63 = vmul.f32 %v488_v62, %v484_v61  ;;  %v1018_v62 = vld [vmem:[%s2970_s4 + $0x8] sm:$0xff] }
 0x6bf   :  { %492 = vrot.lane.b32.xlu1 %v490_v63, %s2502_s30  ;;  %v1017_v63 = vld [vmem:[%s2970_s4] sm:$0xff] }
 0x731   :  { %v493_v3 = vpop.permute.xlu1 %492 }
 0x732   :  { %v495_v4 = vadd.f32 %v493_v3, %v485_v1  ;;  %v1010_v1 = vld [vmem:[#allocation2 + $0x8] sm:$0xff] }
 0x734   :  { %2420 = vtanh.f32 %v495_v4 }
 0x741   :  { %v2421_v8 = vpop.eup %2420 }
 0x742   :  { %498 = vrot.lane.b32.xlu0 %v2421_v8, %s2501_s29 }
 0x7b4   :  { %v499_v10 = vpop.permute.xlu0 %498 }
 0x7b5   :  { %v501_v11 = vmul.f32 %v499_v10, %v484_v61  ;;  %v1009_v61 = vld [vmem:[#allocation2] sm:$0xff] }
 0x7b7   :  { %503 = vrot.lane.b32.xlu1 %v501_v11, %s2502_s30  ;;  %v188_v11 = vadd.f32 %v2621_v9, %v2689_v54 }
 0x829   :  { %v504_v12 = vpop.permute.xlu1 %503 }
 0x82a   :  { %507 = vst.msk [vmem:[#allocation2 + $0x10] sm:$0xff] %vm209_vm3, %v504_v12  ;;  %2238 = vmatmul.mubr.msk.f32.vlgmr.msra.gmra.mxu1 %vm209_vm3, %v504_v12 }
 0x82b   :  { %2252 = vmatpush3.msra.mxu1 %v2565_v2  ;;  %2259 = vmatprep.mubr.msk.f32.mxu1 %vm2500_vm0, %v2499_v0 }
 0x82c   :  { %2253 = vmatprep.subr.mxu1 %v2499_v0 }
 0x82d   :  { %2254 = vmatpush3.msra.mxu1 %v2577_v5 }
 0x82e   :  { %2255 = vmatprep.subr.mxu1 %v2499_v0 }
 0x82f   :  { %2256 = vmatpush3.msra.mxu1 %v2585_v6 }
 0x830   :  { %2257 = vmatprep.subr.mxu1 %v2499_v0 }
 0x831   :  { %2258 = vmatpush3.msra.mxu1 %v2593_v7  ;;  %v1011_v3 = vld [vmem:[#allocation2 + $0x10] sm:$0xff] }
 0x832   :  { %2273 = vmatprep.subr.mxu1 %v2499_v0 }
 0x8ea   :  { %v578_v14 = vpop.f32.mrf.mxu1 }
 0x8eb   :  { %v579_v15 = vadd.f32 %v578_v14, %v173_v13 }
 0x8ec   :  { %v2239_v16 = vpop.f32.mrf.mxu1 }
 0x8ed   :  { %2422 = vtanh.f32 %v579_v15 }
 0x8fa   :  { %v2423_v17 = vpop.eup %2422 }
 0x8fb   :  { %587 = vrot.lane.b32.xlu0 %v2423_v17, %s2501_s29  ;;  %v583_v18 = vmul.f32 0.5, %v2423_v17 }
 0x8fd   :  { %v584_v19 = vadd.f32 0.5, %v583_v18 }
 0x8ff   :  { %v585_v22 = vmul.f32 %v584_v19, %v495_v4 }
 0x96d   :  { %v588_v20 = vpop.permute.xlu0 %587 }
 0x96e   :  { %v590_v21 = vmul.f32 %v588_v20, %v584_v19 }
 0x970   :  { %592 = vrot.lane.b32.xlu1 %v590_v21, %s2502_s30 }
 0x9e2   :  { %v593_v23 = vpop.permute.xlu1 %592 }
 0x9e3   :  { %v595_v24 = vadd.f32 %v593_v23, %v585_v22  ;;  %v2780_v23 = vld [vmem:[%s2971_s5 + $0x18] sm:$0xff] }
 0x9e5   :  { %2424 = vtanh.f32 %v595_v24 }
 0x9f2   :  { %v2425_v25 = vpop.eup %2424 }
 0x9f3   :  { %598 = vrot.lane.b32.xlu0 %v2425_v25, %s2501_s29  ;;  %v2793_v25 = vld [vmem:[%s2971_s5 + $0x8] sm:$0xff] }
 0xa65   :  { %v599_v26 = vpop.permute.xlu0 %598 }
 0xa66   :  { %v601_v27 = vmul.f32 %v599_v26, %v584_v19  ;;  %v2800_v26 = vld [vmem:[%s2971_s5] sm:$0xff] }
 0xa68   :  { %603 = vrot.lane.b32.xlu1 %v601_v27, %s2502_s30 }
 0xada   :  { %v604_v28 = vpop.permute.xlu1 %603 }
 0xadb   :  { %607 = vst.msk [vmem:[#allocation2 + $0x18] sm:$0xff] %vm209_vm3, %v604_v28  ;;  %2249 = vmatmul.mubr.msk.f32.vlgmr.msra.gmra.mxu0 %vm209_vm3, %v604_v28 }
 0xadc   :  { %2263 = vmatpush3.msra.mxu0 %v2565_v2  ;;  %2270 = vmatprep.mubr.msk.f32.mxu0 %vm2500_vm0, %v2499_v0 }
 0xadd   :  { %2264 = vmatprep.subr.mxu0 %v2499_v0 }
 0xade   :  { %2265 = vmatpush3.msra.mxu0 %v2577_v5 }
 0xadf   :  { %2266 = vmatprep.subr.mxu0 %v2499_v0 }
 0xae0   :  { %2267 = vmatpush3.msra.mxu0 %v2585_v6 }
 0xae1   :  { %2268 = vmatprep.subr.mxu0 %v2499_v0 }
 0xae2   :  { %2269 = vmatpush3.msra.mxu0 %v2593_v7  ;;  %v1012_v4 = vld [vmem:[#allocation2 + $0x18] sm:$0xff] }
 0xb9b   :  { %v678_v30 = vpop.f32.mrf.mxu0 }
 0xb9c   :  { %v679_v31 = vadd.f32 %v678_v30, %v178_v29 }
 0xb9d   :  { %v2250_v32 = vpop.f32.mrf.mxu0 }
 0xb9e   :  { %2426 = vtanh.f32 %v679_v31  ;;  %v193_v31 = vadd.f32 %v2687_v53, %v2621_v9 }
 0xbab   :  { %v2427_v33 = vpop.eup %2426 }
 0xbac   :  { %687 = vrot.lane.b32.xlu0 %v2427_v33, %s2501_s29  ;;  %v683_v34 = vmul.f32 0.5, %v2427_v33 }
 0xbae   :  { %v684_v35 = vadd.f32 0.5, %v683_v34 }
 0xbb0   :  { %v685_v38 = vmul.f32 %v684_v35, %v595_v24  ;;  %v2786_v24 = vld [vmem:[%s2971_s5 + $0x10] sm:$0xff] }
 0xc1e   :  { %v688_v36 = vpop.permute.xlu0 %687 }
 0xc1f   :  { %v690_v37 = vmul.f32 %v688_v36, %v684_v35 }
 0xc21   :  { %692 = vrot.lane.b32.xlu1 %v690_v37, %s2502_s30  ;;  %v2835_v37 = vld [vmem:[%s2972_s6] ss:$0 sm:$0xff] }
 0xc93   :  { %v693_v39 = vpop.permute.xlu1 %692 }
 0xc94   :  { %v695_v40 = vadd.f32 %v693_v39, %v685_v38 }
 0xc96   :  { %2428 = vtanh.f32 %v695_v40 }
 0xca3   :  { %v2429_v41 = vpop.eup %2428 }
 0xca4   :  { %698 = vrot.lane.b32.xlu0 %v2429_v41, %s2501_s29 }
 0xd16   :  { %v699_v42 = vpop.permute.xlu0 %698 }
 0xd17   :  { %v701_v43 = vmul.f32 %v699_v42, %v684_v35 }
 0xd19   :  { %703 = vrot.lane.b32.xlu1 %v701_v43, %s2502_s30 }
 0xd8b   :  { %v704_v44 = vpop.permute.xlu1 %703 }
 0xd8c   :  { %707 = vst.msk [vmem:[#allocation2 + $0x20] sm:$0xff] %vm209_vm3, %v704_v44  ;;  %2260 = vmatmul.mubr.msk.f32.vlgmr.msra.gmra.mxu1 %vm209_vm3, %v704_v44 }
 0xd8d   :  { %2274 = vmatpush3.msra.mxu1 %v2565_v2  ;;  %2281 = vmatprep.mubr.msk.f32.mxu1 %vm2500_vm0, %v2499_v0  ;;  %v183_v2 = vadd.f32 %v2683_v51, %v2621_v9  ;;  %v1020_v51 = vld [vmem:[%s2970_s4 + $0x18] sm:$0xff] }
 0xd8e   :  { %2275 = vmatprep.subr.mxu1 %v2499_v0  ;;  %2284 = vmatprep.subr.mxu0 %v1020_v51 }
 0xd8f   :  { %2276 = vmatpush3.msra.mxu1 %v2577_v5 }
 0xd90   :  { %2277 = vmatprep.subr.mxu1 %v2499_v0 }
 0xd91   :  { %2278 = vmatpush3.msra.mxu1 %v2585_v6 }
 0xd92   :  { %2279 = vmatprep.subr.mxu1 %v2499_v0 }
 0xd93   :  { %2280 = vmatpush3.msra.mxu1 %v2593_v7  ;;  %v1013_v8 = vld [vmem:[#allocation2 + $0x20] sm:$0xff] }
 0xd94   :  { %2304 = vmatprep.subr.mxu1 %v2499_v0 }
 0xe4c   :  { %v778_v45 = vpop.f32.mrf.mxu1 }
 0xe4d   :  { %v779_v46 = vadd.f32 %v778_v45, %v183_v2 }
 0xe4e   :  { %v2261_v47 = vpop.f32.mrf.mxu1 }
 0xe4f   :  { %2430 = vtanh.f32 %v779_v46 }
 0xe5c   :  { %v2431_v48 = vpop.eup %2430 }
 0xe5d   :  { %787 = vrot.lane.b32.xlu0 %v2431_v48, %s2501_s29  ;;  %v783_v5 = vmul.f32 0.5, %v2431_v48 }
 0xe5f   :  { %v784_v49 = vadd.f32 0.5, %v783_v5 }
 0xe61   :  { %v785_v52 = vmul.f32 %v784_v49, %v695_v40 }
 0xecf   :  { %v788_v50 = vpop.permute.xlu0 %787 }
 0xed0   :  { %v790_v6 = vmul.f32 %v788_v50, %v784_v49 }
 0xed2   :  { %792 = vrot.lane.b32.xlu1 %v790_v6, %s2502_s30 }
 0xf44   :  { %v793_v7 = vpop.permute.xlu1 %792 }
 0xf45   :  { %v795_v55 = vadd.f32 %v793_v7, %v785_v52 }
 0xf47   :  { %2432 = vtanh.f32 %v795_v55 }
 0xf54   :  { %v2433_v56 = vpop.eup %2432 }
 0xf55   :  { %798 = vrot.lane.b32.xlu0 %v2433_v56, %s2501_s29 }
 0xfc7   :  { %v799_v57 = vpop.permute.xlu0 %798 }
 0xfc8   :  { %v801_v58 = vmul.f32 %v799_v57, %v784_v49 }
 0xfca   :  { %803 = vrot.lane.b32.xlu1 %v801_v58, %s2502_s30 }
0x103c   :  { %v804_v59 = vpop.permute.xlu1 %803 }
0x103d   :  { %807 = vst.msk [vmem:[#allocation2 + $0x28] sm:$0xff] %vm209_vm3, %v804_v59  ;;  %2271 = vmatmul.mubr.msk.f32.vlgmr.msra.gmra.mxu0 %vm209_vm3, %v804_v59 }
0x103e   :  { %2285 = vmatpush3.msra.mxu0 %v1020_v51  ;;  %2292 = vmatprep.mubr.msk.f32.mxu0 %vm209_vm3, %v1009_v61 }
0x103f   :  { %2286 = vmatprep.subr.mxu0 %v1019_v60 }
0x1040   :  { %2287 = vmatpush3.msra.mxu0 %v1019_v60 }
0x1041   :  { %2288 = vmatprep.subr.mxu0 %v1018_v62 }
0x1042   :  { %2289 = vmatpush3.msra.mxu0 %v1018_v62 }
0x1043   :  { %2290 = vmatprep.subr.mxu0 %v1017_v63 }
0x1044   :  { %2291 = vmatpush3.msra.mxu0 %v1017_v63  ;;  %v1014_v10 = vld [vmem:[#allocation2 + $0x28] sm:$0xff] }
0x1045   :  { %2293 = vmatmul.mubr.msk.f32.vlgmr.msra.gmra.mxu0 %vm209_vm3, %v1010_v1  ;;  %2326 = vmatprep.subr.mxu0 %v2499_v0 }
0x1046   :  { %2295 = vmatprep.mubr.msk.f32.mxu0 %vm209_vm3, %v1011_v3  ;;  %2327 = vmatpush3.msra.mxu0 %v2780_v23 }
0x1047   :  { %2328 = vmatprep.subr.mxu0 %v2499_v0 }
0x1048   :  { %2329 = vmatpush3.msra.mxu0 %v2786_v24 }
0x1049   :  { %2296 = vmatmul.mubr.msk.f32.gmra.mxu0 %vm209_vm3, %v1012_v4  ;;  %2330 = vmatprep.subr.mxu0 %v2499_v0 }
0x104a   :  { %2298 = vmatprep.mubr.msk.f32.mxu0 %vm209_vm3, %v1013_v8  ;;  %2331 = vmatpush3.msra.mxu0 %v2793_v25 }
0x104b   :  { %2332 = vmatprep.subr.mxu0 %v2499_v0 }
0x104c   :  { %2333 = vmatpush3.msra.mxu0 %v2800_v26 }
0x104d   :  { %2299 = vmatmul.mubr.msk.f32.gmra.mxu0 %vm209_vm3, %v1014_v10  ;;  %2348 = vmatprep.subr.mxu0 %v2499_v0 }
0x10fd   :  { %v878_v12 = vpop.f32.mrf.mxu0 }
0x10fe   :  { %v879_v13 = vadd.f32 %v878_v12, %v188_v11 }
0x10ff   :  { %v2272_v14 = vpop.f32.mrf.mxu0 }
0x1100   :  { %2434 = vtanh.f32 %v879_v13 }
0x1105   :  { %v2294_v32 = vpop.f32.mrf.mxu0 }
0x1106   :  { %v1124_v61 = vadd.f32 %v2294_v32, %v2835_v37 }
0x1107   :  { %v1118_v36 = vpop.f32.mrf.mxu0 }
0x1108   :  { %v1119_v38 = vadd.f32 %v2835_v37, %v1118_v36 }
0x110d   :  { %v2435_v15 = vpop.eup %2434 }
0x110e   :  { %887 = vrot.lane.b32.xlu0 %v2435_v15, %s2501_s29  ;;  %v883_v16 = vmul.f32 0.5, %v2435_v15 }
0x1110   :  { %v884_v17 = vadd.f32 0.5, %v883_v16 }
0x1112   :  { %v885_v20 = vmul.f32 %v884_v17, %v795_v55 }
0x1180   :  { %v888_v18 = vpop.permute.xlu0 %887 }
0x1181   :  { %v890_v19 = vmul.f32 %v888_v18, %v884_v17 }
0x1183   :  { %892 = vrot.lane.b32.xlu1 %v890_v19, %s2502_s30 }
0x11f5   :  { %v893_v21 = vpop.permute.xlu1 %892 }
0x11f6   :  { %v2773_v22 = vadd.f32 %v893_v21, %v885_v20  ;;  %v2297_v21 = vpop.f32.mrf.mxu0 }
0x11f8   :  { %2436 = vtanh.f32 %v2773_v22 }
0x1205   :  { %v2437_v54 = vpop.eup %2436 }
0x1206   :  { %898 = vrot.lane.b32.xlu0 %v2437_v54, %s2501_s29 }
0x1278   :  { %v899_v27 = vpop.permute.xlu0 %898 }
0x1279   :  { %v901_v28 = vmul.f32 %v899_v27, %v884_v17 }
0x127b   :  { %903 = vrot.lane.b32.xlu1 %v901_v28, %s2502_s30 }
0x12ed   :  { %v904_v29 = vpop.permute.xlu1 %903 }
0x12ee   :  { %907 = vst.msk [vmem:[#allocation2 + $0x30] sm:$0xff] %vm209_vm3, %v904_v29  ;;  %2282 = vmatmul.mubr.msk.f32.vlgmr.msra.gmra.mxu1 %vm209_vm3, %v904_v29 }
0x12ef   :  { %2305 = vmatpush3.msra.mxu1 %v2780_v23  ;;  %2312 = vmatprep.mubr.msk.f32.mxu1 %vm2500_vm0, %v2499_v0 }
0x12f0   :  { %2306 = vmatprep.subr.mxu1 %v2499_v0 }
0x12f1   :  { %2307 = vmatpush3.msra.mxu1 %v2786_v24 }
0x12f2   :  { %2308 = vmatprep.subr.mxu1 %v2499_v0 }
0x12f3   :  { %2309 = vmatpush3.msra.mxu1 %v2793_v25 }
0x12f4   :  { %2310 = vmatprep.subr.mxu1 %v2499_v0 }
0x12f5   :  { %2311 = vmatpush3.msra.mxu1 %v2800_v26  ;;  %v1015_v30 = vld [vmem:[#allocation2 + $0x30] sm:$0xff] }
0x12f6   :  { %2313 = vmatmul.mubr.f32.vlgmr.msra.gmra.mxu1 %v2499_v0  ;;  %2301 = vmatprep.mubr.msk.f32.mxu0 %vm209_vm3, %v1015_v30 }
0x12f7   :  { %2315 = vmatprep.subr.mxu1 %v2499_v0  ;;  %2323 = vmatprep.mubr.msk.f32.mxu1 %vm2500_vm0, %v2499_v0 }
0x12f8   :  { %2316 = vmatpush3.msra.mxu1 %v2780_v23 }
0x12f9   :  { %2317 = vmatprep.subr.mxu1 %v2499_v0 }
0x12fa   :  { %2318 = vmatpush3.msra.mxu1 %v2786_v24 }
0x12fb   :  { %2319 = vmatprep.subr.mxu1 %v2499_v0 }
0x12fc   :  { %2320 = vmatpush3.msra.mxu1 %v2793_v25 }
0x12fd   :  { %2321 = vmatprep.subr.mxu1 %v2499_v0 }
0x12fe   :  { %2322 = vmatpush3.msra.mxu1 %v2800_v26 }
0x12ff   :  { %2337 = vmatprep.subr.mxu1 %v2499_v0 }
0x13ae   :  { %v978_v33 = vpop.f32.mrf.mxu1 }
0x13af   :  { %v979_v34 = vadd.f32 %v978_v33, %v193_v31 }
0x13b0   :  { %v2283_v35 = vpop.f32.mrf.mxu1 }
0x13b6   :  { %v1236_v39 = vpop.f32.mrf.mxu1 }
0x13b7   :  { %v1237_v40 = vadd.f32 %v1236_v39, %v1119_v38 }
0x13b8   :  { %v2314_v41 = vpop.f32.mrf.mxu1 }
0x13b9   :  { %2438 = vtanh.f32 %v1237_v40 }
0x13c6   :  { %v2439_v42 = vpop.eup %2438 }
0x13c7   :  { %1245 = vrot.lane.b32.xlu0 %v2439_v42, %s2501_s29  ;;  %v1241_v9 = vmul.f32 0.5, %v2439_v42 }
0x13c9   :  { %v1242_v53 = vadd.f32 0.5, %v1241_v9 }
0x13cb   :  { %v1243_v2 = vmul.f32 0.0, %v1242_v53 }
0x1439   :  { %v1246_v43 = vpop.permute.xlu0 %1245 }
0x143a   :  { %v1248_v44 = vmul.f32 %v1246_v43, %v1242_v53 }
0x143c   :  { %1250 = vrot.lane.b32.xlu1 %v1248_v44, %s2502_s30 }
0x14ae   :  { %v1251_v45 = vpop.permute.xlu1 %1250 }
0x14af   :  { %v1253_v46 = vadd.f32 %v1251_v45, %v1243_v2  ;;  %v1134_v2 = vadd.f32 %v2297_v21, %v2835_v37 }
0x14b1   :  { %2440 = vtanh.f32 %v1253_v46 }
0x14b2   :  { %2442 = vtanh.f32 %v979_v34 }
0x14be   :  { %v2441_v47 = vpop.eup %2440 }
0x14bf   :  { %1256 = vrot.lane.b32.xlu0 %v2441_v47, %s2501_s29  ;;  %v2443_v48 = vpop.eup %2442 }
0x14c0   :  { %v983_v5 = vmul.f32 0.5, %v2443_v48 }
0x14c2   :  { %v984_v6 = vadd.f32 0.5, %v983_v5 }
0x14c3   :  { %987 = vrot.lane.b32.xlu0 %v2443_v48, %s2501_s29 }
0x14c4   :  { %v985_v51 = vmul.f32 %v984_v6, %v2773_v22  ;;  %v1128_v22 = vpop.f32.mrf.mxu0 }
0x14c5   :  { %v1129_v30 = vadd.f32 %v2835_v37, %v1128_v22 }
0x14c6   :  { %v2879_v54 = vpop.f32.mrf.mxu0 }
0x14c8   :  { %v2881_v27 = vpop.f32.mrf.mxu0 }
0x1531   :  { %v1257_v49 = vpop.permute.xlu0 %1256 }
0x1532   :  { %v1259_v50 = vmul.f32 %v1257_v49, %v1242_v53 }
0x1534   :  { %1262 = vrot.lane.b32.xlu1 %v1259_v50, %s2502_s30 }
0x1535   :  { %v988_v52 = vpop.permute.xlu0 %987 }
0x1536   :  { %v990_v7 = vmul.f32 %v988_v52, %v984_v6 }
0x1538   :  { %992 = vrot.lane.b32.xlu0 %v990_v7, %s2502_s30 }
0x15a6   :  { %v1263_v55 = vpop.permute.xlu1 %1262 }
0x15a7   :  { %2324 = vmatmul.mubr.msk.f32.vlgmr.msra.gmra.mxu1 %vm209_vm3, %v1263_v55 }
0x15a8   :  { %2338 = vmatpush3.msra.mxu1 %v2780_v23  ;;  %2345 = vmatprep.mubr.msk.f32.mxu1 %vm2500_vm0, %v2499_v0 }
0x15a9   :  { %2339 = vmatprep.subr.mxu1 %v2499_v0 }
0x15aa   :  { %v993_v56 = vpop.permute.xlu0 %992  ;;  %2340 = vmatpush3.msra.mxu1 %v2786_v24 }
0x15ab   :  { %v995_v57 = vadd.f32 %v993_v56, %v985_v51  ;;  %2341 = vmatprep.subr.mxu1 %v2499_v0 }
0x15ac   :  { %2342 = vmatpush3.msra.mxu1 %v2793_v25 }
0x15ad   :  { %2444 = vtanh.f32 %v995_v57  ;;  %2343 = vmatprep.subr.mxu1 %v2499_v0 }
0x15ae   :  { %2344 = vmatpush3.msra.mxu1 %v2800_v26 }
0x15af   :  { %2359 = vmatprep.subr.mxu1 %v2499_v0 }
0x15ba   :  { %v2445_v58 = vpop.eup %2444 }
0x15bb   :  { %998 = vrot.lane.b32.xlu0 %v2445_v58, %s2501_s29 }
0x162d   :  { %v999_v59 = vpop.permute.xlu0 %998 }
0x162e   :  { %v1001_v60 = vmul.f32 %v999_v59, %v984_v6  ;;  %v1139_v59 = vadd.f32 %v2835_v37, %v2881_v27 }
0x1630   :  { %1003 = vrot.lane.b32.xlu0 %v1001_v60, %s2502_s30 }
0x1667   :  { %v1332_v62 = vpop.f32.mrf.mxu1 }
0x1668   :  { %v1333_v63 = vadd.f32 %v1332_v62, %v1124_v61 }
0x1669   :  { %v2325_v1 = vpop.f32.mrf.mxu1 }
0x166a   :  { %2446 = vtanh.f32 %v1333_v63 }
0x1677   :  { %v2447_v3 = vpop.eup %2446 }
0x1678   :  { %1341 = vrot.lane.b32.xlu1 %v2447_v3, %s2501_s29  ;;  %v1337_v10 = vmul.f32 0.5, %v2447_v3 }
0x167a   :  { %v1338_v11 = vadd.f32 0.5, %v1337_v10 }
0x167c   :  { %v1339_v14 = vmul.f32 %v1338_v11, %v1253_v46 }
0x16a2   :  { %v1004_v4 = vpop.permute.xlu0 %1003 }
0x16a3   :  { %1007 = vst.msk [vmem:[#allocation2 + $0x38] sm:$0xff] %vm209_vm3, %v1004_v4  ;;  %1008 = vst.msk [vmem:[#allocation4] sm:$0xff] %vm209_vm3, %v1004_v4 }
0x16aa   :  { %v1016_v8 = vld [vmem:[#allocation2 + $0x38] sm:$0xff] }
0x16ab   :  { %2302 = vmatmul.mubr.msk.f32.gmra.mxu0 %vm209_vm3, %v1016_v8 }
0x16ac   :  { %2334 = vmatprep.mubr.msk.f32.mxu0 %vm2500_vm0, %v2499_v0 }
0x16ea   :  { %v1342_v12 = vpop.permute.xlu1 %1341 }
0x16eb   :  { %v1344_v13 = vmul.f32 %v1342_v12, %v1338_v11 }
0x16ed   :  { %1346 = vrot.lane.b32.xlu1 %v1344_v13, %s2502_s30 }
0x175f   :  { %v1347_v15 = vpop.permute.xlu1 %1346 }
0x1760   :  { %v1349_v16 = vadd.f32 %v1347_v15, %v1339_v14 }
0x1762   :  { %2448 = vtanh.f32 %v1349_v16 }
0x176b   :  { %v2883_v28 = vpop.f32.mrf.mxu0 }
0x176d   :  { %v2885_v29 = vpop.f32.mrf.mxu0 }
0x176f   :  { %v2449_v17 = vpop.eup %2448 }
0x1770   :  { %1352 = vrot.lane.b32.xlu1 %v2449_v17, %s2501_s29  ;;  %v1144_v17 = vadd.f32 %v2879_v54, %v2835_v37 }
0x17e2   :  { %v1353_v18 = vpop.permute.xlu1 %1352 }
0x17e3   :  { %v1355_v19 = vmul.f32 %v1353_v18, %v1338_v11 }
0x17e5   :  { %1358 = vrot.lane.b32.xlu1 %v1355_v19, %s2502_s30 }
0x1857   :  { %v1359_v20 = vpop.permute.xlu1 %1358 }
0x1858   :  { %2335 = vmatmul.mubr.msk.f32.vlgmr.msra.gmra.mxu0 %vm209_vm3, %v1359_v20 }
0x1859   :  { %2349 = vmatpush3.msra.mxu0 %v2780_v23  ;;  %2356 = vmatprep.mubr.msk.f32.mxu0 %vm2500_vm0, %v2499_v0 }
0x185a   :  { %2350 = vmatprep.subr.mxu0 %v2499_v0 }
0x185b   :  { %2351 = vmatpush3.msra.mxu0 %v2786_v24 }
0x185c   :  { %2352 = vmatprep.subr.mxu0 %v2499_v0 }
0x185d   :  { %2353 = vmatpush3.msra.mxu0 %v2793_v25 }
0x185e   :  { %2354 = vmatprep.subr.mxu0 %v2499_v0 }
0x185f   :  { %2355 = vmatpush3.msra.mxu0 %v2800_v26 }
0x1860   :  { %2370 = vmatprep.subr.mxu0 %v2499_v0 }
0x1918   :  { %v1428_v31 = vpop.f32.mrf.mxu0 }
0x1919   :  { %v1429_v32 = vadd.f32 %v1428_v31, %v1129_v30 }
0x191a   :  { %v2336_v33 = vpop.f32.mrf.mxu0 }
0x191b   :  { %2450 = vtanh.f32 %v1429_v32  ;;  %v1937_v33 = vld [vmem:[#allocation4] sm:$0xff] }
0x1928   :  { %v2451_v34 = vpop.eup %2450 }
0x1929   :  { %1437 = vrot.lane.b32.xlu0 %v2451_v34, %s2501_s29  ;;  %v1433_v35 = vmul.f32 0.5, %v2451_v34  ;;  %v1149_v34 = vadd.f32 %v2835_v37, %v2885_v29 }
0x192b   :  { %v1434_v36 = vadd.f32 0.5, %v1433_v35 }
0x192d   :  { %v1435_v40 = vmul.f32 %v1434_v36, %v1349_v16 }
0x199b   :  { %v1438_v38 = vpop.permute.xlu0 %1437 }
0x199c   :  { %v1440_v39 = vmul.f32 %v1438_v38, %v1434_v36 }
0x199e   :  { %1442 = vrot.lane.b32.xlu1 %v1440_v39, %s2502_s30 }
0x1a10   :  { %v1443_v41 = vpop.permute.xlu1 %1442 }
0x1a11   :  { %v1445_v42 = vadd.f32 %v1443_v41, %v1435_v40 }
0x1a13   :  { %2452 = vtanh.f32 %v1445_v42 }
0x1a20   :  { %v2453_v9 = vpop.eup %2452 }
0x1a21   :  { %1448 = vrot.lane.b32.xlu0 %v2453_v9, %s2501_s29 }
0x1a93   :  { %v1449_v53 = vpop.permute.xlu0 %1448 }
0x1a94   :  { %v1451_v43 = vmul.f32 %v1449_v53, %v1434_v36 }
0x1a96   :  { %1454 = vrot.lane.b32.xlu1 %v1451_v43, %s2502_s30 }
0x1b08   :  { %v1455_v44 = vpop.permute.xlu1 %1454 }
0x1b09   :  { %2346 = vmatmul.mubr.msk.f32.vlgmr.msra.gmra.mxu1 %vm209_vm3, %v1455_v44 }
0x1b0a   :  { %2360 = vmatpush3.msra.mxu1 %v2780_v23  ;;  %2367 = vmatprep.mubr.msk.f32.mxu1 %vm2500_vm0, %v2499_v0 }
0x1b0b   :  { %2361 = vmatprep.subr.mxu1 %v2499_v0 }
0x1b0c   :  { %2362 = vmatpush3.msra.mxu1 %v2786_v24 }
0x1b0d   :  { %2363 = vmatprep.subr.mxu1 %v2499_v0 }
0x1b0e   :  { %2364 = vmatpush3.msra.mxu1 %v2793_v25 }
0x1b0f   :  { %2365 = vmatprep.subr.mxu1 %v2499_v0 }
0x1b10   :  { %2366 = vmatpush3.msra.mxu1 %v2800_v26 }
0x1b11   :  { %2381 = vmatprep.subr.mxu1 %v2499_v0 }
0x1bc9   :  { %v1524_v45 = vpop.f32.mrf.mxu1 }
0x1bca   :  { %v1525_v46 = vadd.f32 %v1524_v45, %v1134_v2 }
0x1bcb   :  { %v2347_v47 = vpop.f32.mrf.mxu1 }
0x1bcc   :  { %2454 = vtanh.f32 %v1525_v46  ;;  %v1154_v47 = vadd.f32 %v2883_v28, %v2835_v37  ;;  %v1942_v37 = vld [vmem:[#allocation5 + $0x18] sm:$0xff]  ;;  %v1941_v28 = vld [vmem:[#allocation5 + $0x10] sm:$0xff] }
0x1bd9   :  { %v2455_v48 = vpop.eup %2454 }
0x1bda   :  { %1533 = vrot.lane.b32.xlu0 %v2455_v48, %s2501_s29  ;;  %v1529_v5 = vmul.f32 0.5, %v2455_v48 }
0x1bdc   :  { %v1530_v49 = vadd.f32 0.5, %v1529_v5 }
0x1bde   :  { %v1531_v52 = vmul.f32 %v1530_v49, %v1445_v42 }
0x1c4c   :  { %v1534_v50 = vpop.permute.xlu0 %1533 }
0x1c4d   :  { %v1536_v6 = vmul.f32 %v1534_v50, %v1530_v49 }
0x1c4f   :  { %1538 = vrot.lane.b32.xlu1 %v1536_v6, %s2502_s30 }
0x1cc1   :  { %v1539_v7 = vpop.permute.xlu1 %1538 }
0x1cc2   :  { %v1541_v55 = vadd.f32 %v1539_v7, %v1531_v52 }
0x1cc4   :  { %2456 = vtanh.f32 %v1541_v55 }
0x1cd1   :  { %v2457_v51 = vpop.eup %2456 }
0x1cd2   :  { %1544 = vrot.lane.b32.xlu0 %v2457_v51, %s2501_s29 }
0x1d44   :  { %v1545_v56 = vpop.permute.xlu0 %1544 }
0x1d45   :  { %v1547_v57 = vmul.f32 %v1545_v56, %v1530_v49 }
0x1d47   :  { %1550 = vrot.lane.b32.xlu1 %v1547_v57, %s2502_s30 }
0x1db9   :  { %v1551_v58 = vpop.permute.xlu1 %1550 }
0x1dba   :  { %2357 = vmatmul.mubr.msk.f32.vlgmr.msra.gmra.mxu0 %vm209_vm3, %v1551_v58 }
0x1dbb   :  { %2371 = vmatpush3.msra.mxu0 %v2780_v23  ;;  %2378 = vmatprep.mubr.msk.f32.mxu0 %vm2500_vm0, %v2499_v0 }
0x1dbc   :  { %2372 = vmatprep.subr.mxu0 %v2499_v0 }
0x1dbd   :  { %2373 = vmatpush3.msra.mxu0 %v2786_v24 }
0x1dbe   :  { %2374 = vmatprep.subr.mxu0 %v2499_v0 }
0x1dbf   :  { %2375 = vmatpush3.msra.mxu0 %v2793_v25 }
0x1dc0   :  { %2376 = vmatprep.subr.mxu0 %v2499_v0 }
0x1dc1   :  { %2377 = vmatpush3.msra.mxu0 %v2800_v26 }
0x1dc2   :  { %2392 = vmatprep.subr.mxu0 %v1942_v37 }
0x1e7a   :  { %v1620_v60 = vpop.f32.mrf.mxu0 }
0x1e7b   :  { %v1621_v61 = vadd.f32 %v1620_v60, %v1139_v59  ;;  %v1940_v59 = vld [vmem:[#allocation5 + $0x8] sm:$0xff]  ;;  %v1939_v60 = vld [vmem:[#allocation5] sm:$0xff] }
0x1e7c   :  { %v2358_v62 = vpop.f32.mrf.mxu0 }
0x1e7d   :  { %2458 = vtanh.f32 %v1621_v61 }
0x1e8a   :  { %v2459_v63 = vpop.eup %2458 }
0x1e8b   :  { %1629 = vrot.lane.b32.xlu0 %v2459_v63, %s2501_s29  ;;  %v1625_v1 = vmul.f32 0.5, %v2459_v63 }
0x1e8d   :  { %v1626_v3 = vadd.f32 0.5, %v1625_v1 }
0x1e8f   :  { %v1627_v10 = vmul.f32 %v1626_v3, %v1541_v55 }
0x1efd   :  { %v1630_v4 = vpop.permute.xlu0 %1629 }
0x1efe   :  { %v1632_v8 = vmul.f32 %v1630_v4, %v1626_v3 }
0x1f00   :  { %1634 = vrot.lane.b32.xlu1 %v1632_v8, %s2502_s30 }
0x1f72   :  { %v1635_v11 = vpop.permute.xlu1 %1634 }
0x1f73   :  { %v1637_v12 = vadd.f32 %v1635_v11, %v1627_v10 }
0x1f75   :  { %2460 = vtanh.f32 %v1637_v12 }
0x1f82   :  { %v2461_v13 = vpop.eup %2460 }
0x1f83   :  { %1640 = vrot.lane.b32.xlu0 %v2461_v13, %s2501_s29 }
0x1ff5   :  { %v1641_v14 = vpop.permute.xlu0 %1640 }
0x1ff6   :  { %v1643_v15 = vmul.f32 %v1641_v14, %v1626_v3  ;;  %v2072_v3 = vld [vmem:[%s2974_s8] ss:$0 sm:$0xff] }
0x1ff8   :  { %1646 = vrot.lane.b32.xlu1 %v1643_v15, %s2502_s30 }
0x206a   :  { %v1647_v16 = vpop.permute.xlu1 %1646 }
0x206b   :  { %2368 = vmatmul.mubr.msk.f32.vlgmr.msra.gmra.mxu1 %vm209_vm3, %v1647_v16 }
0x206c   :  { %2382 = vmatpush3.msra.mxu1 %v2780_v23  ;;  %2389 = vmatprep.mubr.msk.f32.mxu1 %vm2500_vm0, %v2499_v0 }
0x206d   :  { %2383 = vmatprep.subr.mxu1 %v2499_v0 }
0x206e   :  { %2384 = vmatpush3.msra.mxu1 %v2786_v24 }
0x206f   :  { %2385 = vmatprep.subr.mxu1 %v2499_v0 }
0x2070   :  { %2386 = vmatpush3.msra.mxu1 %v2793_v25 }
0x2071   :  { %2387 = vmatprep.subr.mxu1 %v2499_v0 }
0x2072   :  { %2388 = vmatpush3.msra.mxu1 %v2800_v26 }
0x212b   :  { %v1716_v18 = vpop.f32.mrf.mxu1 }
0x212c   :  { %v1717_v23 = vadd.f32 %v1716_v18, %v1144_v17 }
0x212d   :  { %v2369_v19 = vpop.f32.mrf.mxu1 }
0x212e   :  { %2462 = vtanh.f32 %v1717_v23 }
0x213b   :  { %v2463_v20 = vpop.eup %2462 }
0x213c   :  { %1725 = vrot.lane.b32.xlu0 %v2463_v20, %s2501_s29  ;;  %v1721_v21 = vmul.f32 0.5, %v2463_v20 }
0x213e   :  { %v1722_v24 = vadd.f32 0.5, %v1721_v21 }
0x2140   :  { %v1723_v25 = vmul.f32 %v1722_v24, %v1637_v12 }
0x21ae   :  { %v1726_v22 = vpop.permute.xlu0 %1725 }
0x21af   :  { %v1728_v27 = vmul.f32 %v1726_v22, %v1722_v24 }
0x21b1   :  { %1730 = vrot.lane.b32.xlu1 %v1728_v27, %s2502_s30 }
0x2223   :  { %v1731_v0 = vpop.permute.xlu1 %1730 }
0x2224   :  { %v1733_v30 = vadd.f32 %v1731_v0, %v1723_v25 }
0x2226   :  { %2464 = vtanh.f32 %v1733_v30 }
0x2233   :  { %v2465_v26 = vpop.eup %2464 }
0x2234   :  { %1736 = vrot.lane.b32.xlu0 %v2465_v26, %s2501_s29 }
0x22a6   :  { %v1737_v54 = vpop.permute.xlu0 %1736 }
0x22a7   :  { %v1739_v31 = vmul.f32 %v1737_v54, %v1722_v24 }
0x22a9   :  { %1742 = vrot.lane.b32.xlu1 %v1739_v31, %s2502_s30 }
0x231b   :  { %v1743_v32 = vpop.permute.xlu1 %1742 }
0x231c   :  { %2379 = vmatmul.mubr.msk.f32.vlgmr.msra.gmra.mxu0 %vm209_vm3, %v1743_v32 }
0x231d   :  { %2400 = vmatprep.mubr.msk.f32.mxu0 %vm209_vm3, %v1937_v33  ;;  %2393 = vmatpush3.msra.mxu0 %v1942_v37 }
0x231e   :  { %2394 = vmatprep.subr.mxu0 %v1941_v28 }
0x231f   :  { %2395 = vmatpush3.msra.mxu0 %v1941_v28 }
0x2320   :  { %2396 = vmatprep.subr.mxu0 %v1940_v59 }
0x2321   :  { %2397 = vmatpush3.msra.mxu0 %v1940_v59 }
0x2322   :  { %2398 = vmatprep.subr.mxu0 %v1939_v60 }
0x2323   :  { %2399 = vmatpush3.msra.mxu0 %v1939_v60 }
0x23dc   :  { %v1812_v35 = vpop.f32.mrf.mxu0 }
0x23dd   :  { %v1813_v36 = vadd.f32 %v1812_v35, %v1149_v34 }
0x23de   :  { %v2380_v38 = vpop.f32.mrf.mxu0 }
0x23df   :  { %2466 = vtanh.f32 %v1813_v36 }
0x23ec   :  { %v2467_v39 = vpop.eup %2466 }
0x23ed   :  { %1821 = vrot.lane.b32.xlu0 %v2467_v39, %s2501_s29  ;;  %v1817_v40 = vmul.f32 0.5, %v2467_v39 }
0x23ef   :  { %v1818_v41 = vadd.f32 0.5, %v1817_v40 }
0x23f1   :  { %v1819_v53 = vmul.f32 %v1818_v41, %v1733_v30 }
0x245f   :  { %v1822_v42 = vpop.permute.xlu0 %1821 }
0x2460   :  { %v1824_v9 = vmul.f32 %v1822_v42, %v1818_v41 }
0x2462   :  { %1826 = vrot.lane.b32.xlu1 %v1824_v9, %s2502_s30 }
0x24d4   :  { %v1827_v43 = vpop.permute.xlu1 %1826 }
0x24d5   :  { %v1829_v44 = vadd.f32 %v1827_v43, %v1819_v53 }
0x24d7   :  { %2468 = vtanh.f32 %v1829_v44 }
0x24e4   :  { %v2469_v2 = vpop.eup %2468 }
0x24e5   :  { %1832 = vrot.lane.b32.xlu0 %v2469_v2, %s2501_s29 }
0x2557   :  { %v1833_v29 = vpop.permute.xlu0 %1832 }
0x2558   :  { %v1835_v45 = vmul.f32 %v1833_v29, %v1818_v41 }
0x255a   :  { %1838 = vrot.lane.b32.xlu1 %v1835_v45, %s2502_s30 }
0x25cc   :  { %v1839_v46 = vpop.permute.xlu1 %1838 }
0x25cd   :  { %2390 = vmatmul.mubr.msk.f32.vlgmr.msra.gmra.mxu1 %vm209_vm3, %v1839_v46 }
0x268d   :  { %v1908_v48 = vpop.f32.mrf.mxu1 }
0x268e   :  { %v1909_v5 = vadd.f32 %v1908_v48, %v1154_v47 }
0x268f   :  { %v2391_v49 = vpop.f32.mrf.mxu1 }
0x2690   :  { %2470 = vtanh.f32 %v1909_v5 }
0x269d   :  { %v2471_v50 = vpop.eup %2470 }
0x269e   :  { %1917 = vrot.lane.b32.xlu0 %v2471_v50, %s2501_s29  ;;  %v1913_v6 = vmul.f32 0.5, %v2471_v50 }
0x26a0   :  { %v1914_v52 = vadd.f32 0.5, %v1913_v6 }
0x26a2   :  { %v1915_v51 = vmul.f32 %v1914_v52, %v1829_v44 }
0x2710   :  { %v1918_v7 = vpop.permute.xlu0 %1917 }
0x2711   :  { %v1920_v55 = vmul.f32 %v1918_v7, %v1914_v52 }
0x2713   :  { %1922 = vrot.lane.b32.xlu1 %v1920_v55, %s2502_s30 }
0x2785   :  { %v1923_v56 = vpop.permute.xlu1 %1922 }
0x2786   :  { %v1925_v57 = vadd.f32 %v1923_v56, %v1915_v51 }
0x2788   :  { %2472 = vtanh.f32 %v1925_v57 }
0x2795   :  { %v2473_v58 = vpop.eup %2472 }
0x2796   :  { %1928 = vrot.lane.b32.xlu0 %v2473_v58, %s2501_s29 }
0x2808   :  { %v1929_v61 = vpop.permute.xlu0 %1928 }
0x2809   :  { %v1931_v62 = vmul.f32 %v1929_v61, %v1914_v52 }
0x280b   :  { %1933 = vrot.lane.b32.xlu1 %v1931_v62, %s2502_s30 }
0x287d   :  { %v1934_v63 = vpop.permute.xlu1 %1933 }
0x287e   :  { %1936 = vst.msk [vmem:[#allocation4 + $0x8] sm:$0xff] %vm209_vm3, %v1934_v63 }
0x2885   :  { %v1938_v1 = vld [vmem:[#allocation4 + $0x8] sm:$0xff] }
0x2886   :  { %2401 = vmatmul.mubr.msk.f32.vlgmr.msra.gmra.mxu0 %vm209_vm3, %v1938_v1 }
0x2946   :  { %v2402_v4 = vpop.f32.mrf.mxu0 }
0x2947   :  { %v2028_v8 = vadd.f32 %v2402_v4, %v2072_v3 }
0x2948   :  { %v2022_v10 = vpop.f32.mrf.mxu0 }
0x2949   :  { %2033 = vst.msk [vmem:[%s2975_s9 + $0x8] sm:$0xff] %vm2031_vm4, %v2028_v8  ;;  %v2023_v11 = vadd.f32 %v2072_v3, %v2022_v10 }
0x294b   :  { %2032 = vst.msk [vmem:[%s2975_s9] sm:$0xff] %vm2031_vm4, %v2023_v11 }
0x294c   :  { %2038 = vsyncpa [#allocation6], 1 }

</bundles_post_ra>
